<compile_context>
chip_gen: v6e
topology: v6e:2x2x1
jax: 0.10.0
libtpu: 0.0.40
codegen_flags: <defaults>
</compile_context>

<pallas_src>
import jax
import jax.numpy as jnp
import numpy as np
from jax import lax
from jax.experimental import pallas as pl
from jax.experimental.pallas import tpu as pltpu

_BN_EPS = 1e-5


def _mish_fast(x):
    # x * tanh(softplus(x)) with a single transcendental:
    #   tanh(log1p(e^x)) = n / (n + 2),  n = e^x * (e^x + 2)
    # PyTorch's softplus linearizes above 20; there mish(x) ~= x.
    e = jnp.exp(jnp.minimum(x, 20.0))
    n = e * (e + 2.0)
    y = x * n * pl.reciprocal(n + 2.0, approx=True)
    return jnp.where(x > 20.0, x, y)


def _mish_ref(x):
    sp = jnp.where(x > 20.0, x, jnp.log1p(jnp.exp(jnp.minimum(x, 20.0))))
    return x * jnp.tanh(sp)


def resblock_kernel(x_ref, xt_ref, xb_ref, w1_ref, s1_ref, b1_ref,
                    w2_ref, s2_ref, b2_ref, o_ref):
    # x_ref : (1, TH, W, C)  current strip
    # xt_ref: (1, 1,  W, C)  row just above the strip (clamped at image top)
    # xb_ref: (1, 1,  W, C)  row just below the strip (clamped at image bottom)
    # w1_ref: (C, Ch) bf16;  w2_ref: (9, Ch, C) bf16
    # s*/b* : folded BatchNorm scale / bias, f32
    th, w, c = x_ref.shape[1], x_ref.shape[2], x_ref.shape[3]
    ch = w1_ref.shape[1]
    r = th + 2                      # strip rows + 1-row halo on each side
    rw = r * w

    s = pl.program_id(1)
    top_ok = s > 0
    bot_ok = s < pl.num_programs(1) - 1

    # ---- gather strip + halo rows, flatten to (rows, C) --------------------
    x_rows = jnp.concatenate([xt_ref[0], x_ref[0], xb_ref[0]], axis=0)  # (r,W,C)
    xm = x_rows.reshape(rw, c)                                          # f32

    # ---- BasicConv #1: 1x1 conv (channel matmul) + BN + Mish ---------------
    y1 = jnp.dot(xm.astype(jnp.bfloat16), w1_ref[...],
                 preferred_element_type=jnp.float32)                    # (rw, Ch)
    y1 = _mish_fast(y1 * s1_ref[...] + b1_ref[...])

    # Halo rows that fall outside the image act as conv2's zero padding.
    rrow = lax.broadcasted_iota(jnp.int32, (r, w, ch), 0).reshape(rw, ch)
    wcol = lax.broadcasted_iota(jnp.int32, (r, w, ch), 1).reshape(rw, ch)
    halo_ok = ((rrow > 0) | top_ok) & ((rrow < r - 1) | bot_ok)
    y1 = jnp.where(halo_ok, y1, 0.0)

    # ---- BasicConv #2: 3x3 conv (pad=1) as 9 channel matmuls ---------------
    # W-taps: two zero-filled sublane-shifted copies + edge masks.
    zrow = jnp.zeros((1, ch), jnp.float32)
    left = jnp.concatenate([zrow, y1[:rw - 1, :]], axis=0)   # [i] = y1[i-1]
    right = jnp.concatenate([y1[1:, :], zrow], axis=0)       # [i] = y1[i+1]
    shifts = (
        jnp.where(wcol > 0, left, 0.0),                      # tap w-1
        y1,                                                  # tap w
        jnp.where(wcol < w - 1, right, 0.0),                 # tap w+1
    )
    shifts = tuple(t.astype(jnp.bfloat16) for t in shifts)

    acc = None
    for dh in range(3):
        lo = dh * w                                          # aligned row offset
        for dw in range(3):
            patch = shifts[dw][lo:lo + th * w, :]            # (TH*W, Ch) bf16
            term = jnp.dot(patch, w2_ref[dh * 3 + dw],
                           preferred_element_type=jnp.float32)
            acc = term if acc is None else acc + term
    y2 = _mish_fast(acc * s2_ref[...] + b2_ref[...])         # (TH*W, C) f32

    # ---- residual add -------------------------------------------------------
    x_res = xm[w:w + th * w, :]                              # strip rows only
    o_ref[0] = (x_res + y2).reshape(th, w, c).astype(o_ref.dtype)


def _choose_tile_h(H, max_tile=32):
    """Largest divisor of H that is <= max_tile; small H is split in two so the
    grid still has >1 step per image (pipelining + halo-path coverage)."""
    if H <= max_tile:
        return H // 2 if (H % 2 == 0 and H >= 4) else H
    for t in range(max_tile, 0, -1):
        if H % t == 0:
            return t
    return H


def resblock_pallas(x_nchw, params):
    N, C, H, W = x_nchw.shape
    w1 = params["conv1_w"]                     # (Ch, C, 1, 1)
    w2 = params["conv2_w"]                     # (C, Ch, 3, 3)
    Ch = w1.shape[0]

    # Fold BN (eval mode) into per-channel scale/bias (kept in f32).
    s1 = params["bn1_gamma"] / jnp.sqrt(params["bn1_var"] + _BN_EPS)
    b1 = params["bn1_beta"] - params["bn1_mean"] * s1
    s2 = params["bn2_gamma"] / jnp.sqrt(params["bn2_var"] + _BN_EPS)
    b2 = params["bn2_beta"] - params["bn2_mean"] * s2

    # bf16 weights for the MXU (accumulation stays f32 in-kernel).
    w1_k = jnp.transpose(w1.reshape(Ch, C)).astype(jnp.bfloat16)                  # (C, Ch)
    w2_k = jnp.transpose(w2, (2, 3, 1, 0)).reshape(9, Ch, C).astype(jnp.bfloat16) # (9, Ch, C)

    x_nhwc = jnp.transpose(x_nchw, (0, 2, 3, 1))               # NCHW -> NHWC

    tile_h = _choose_tile_h(H)
    n_strips = H // tile_h

    def x_main_map(n, s):
        return (n, s, 0, 0)

    def x_top_map(n, s):                                       # row above strip
        return (n, jnp.maximum(s * tile_h - 1, 0), 0, 0)

    def x_bot_map(n, s):                                       # row below strip
        return (n, jnp.minimum((s + 1) * tile_h, H - 1), 0, 0)

    out = pl.pallas_call(
        resblock_kernel,
        out_shape=jax.ShapeDtypeStruct((N, H, W, C), x_nchw.dtype),
        grid_spec=pltpu.PrefetchScalarGridSpec(
            num_scalar_prefetch=0,
            grid=(N, n_strips),
            in_specs=[
                pl.BlockSpec((1, tile_h, W, C), x_main_map),
                pl.BlockSpec((1, 1, W, C), x_top_map),
                pl.BlockSpec((1, 1, W, C), x_bot_map),
                pl.BlockSpec((C, Ch), lambda n, s: (0, 0)),
                pl.BlockSpec((1, Ch), lambda n, s: (0, 0)),
                pl.BlockSpec((1, Ch), lambda n, s: (0, 0)),
                pl.BlockSpec((9, Ch, C), lambda n, s: (0, 0, 0)),
                pl.BlockSpec((1, C), lambda n, s: (0, 0)),
                pl.BlockSpec((1, C), lambda n, s: (0, 0)),
            ],
            out_specs=pl.BlockSpec((1, tile_h, W, C), x_main_map),
        ),
        compiler_params=pltpu.CompilerParams(
            dimension_semantics=("parallel", "parallel"),
            vmem_limit_bytes=32 * 1024 * 1024,
        ),
    )(x_nhwc, x_nhwc, x_nhwc,
      w1_k, s1.reshape(1, Ch), b1.reshape(1, Ch),
      w2_k, s2.reshape(1, C), b2.reshape(1, C))

    return jnp.transpose(out, (0, 3, 1, 2))                    # NHWC -> NCHW


def resblock_ref(x, params):
    """Pure-JAX f32 reference (NCHW), mirrors the PyTorch module in eval mode."""
    def bn(y, g, b, m, v):
        return (y - m[None, :, None, None]) / jnp.sqrt(v[None, :, None, None] + _BN_EPS) \
               * g[None, :, None, None] + b[None, :, None, None]

    y = lax.conv_general_dilated(x, params["conv1_w"], (1, 1), "SAME",
                                 dimension_numbers=("NCHW", "OIHW", "NCHW"))
    y = _mish_ref(bn(y, params["bn1_gamma"], params["bn1_beta"],
                     params["bn1_mean"], params["bn1_var"]))
    y = lax.conv_general_dilated(y, params["conv2_w"], (1, 1), "SAME",
                                 dimension_numbers=("NCHW", "OIHW", "NCHW"))
    y = _mish_ref(bn(y, params["bn2_gamma"], params["bn2_beta"],
                     params["bn2_mean"], params["bn2_var"]))
    return x + y


if __name__ == "__main__":
    N, C, H, W = 2, 4, 16, 16
    Ch = C  # hidden_channels defaults to channels

    key = jax.random.PRNGKey(0)
    keys = jax.random.split(key, 11)
    params = {
        "conv1_w":  0.3 * jax.random.normal(keys[0], (Ch, C, 1, 1), jnp.float32),
        "conv2_w":  0.1 * jax.random.normal(keys[1], (C, Ch, 3, 3), jnp.float32),
        "bn1_gamma": 1.0 + 0.1 * jax.random.normal(keys[2], (Ch,), jnp.float32),
        "bn1_beta":  0.1 * jax.random.normal(keys[3], (Ch,), jnp.float32),
        "bn1_mean":  0.1 * jax.random.normal(keys[4], (Ch,), jnp.float32),
        "bn1_var":   0.5 + jnp.abs(jax.random.normal(keys[5], (Ch,), jnp.float32)),
        "bn2_gamma": 1.0 + 0.1 * jax.random.normal(keys[6], (C,), jnp.float32),
        "bn2_beta":  0.1 * jax.random.normal(keys[7], (C,), jnp.float32),
        "bn2_mean":  0.1 * jax.random.normal(keys[8], (C,), jnp.float32),
        "bn2_var":   0.5 + jnp.abs(jax.random.normal(keys[9], (C,), jnp.float32)),
    }
    x = jax.random.normal(keys[10], (N, C, H, W), jnp.float32)

    out = jax.block_until_ready(resblock_pallas(x, params))
    ref = jax.block_until_ready(resblock_ref(x, params))
    # Tolerance accounts for bf16 MXU operands (f32 accumulation) vs f32 ref.
    np.testing.assert_allclose(np.asarray(out), np.asarray(ref), rtol=2e-2, atol=2e-2)
    print("KERNEL_OK")
</pallas_src>

<mosaic_0001>
module attributes {stable_mosaic.version = 11 : i64} {
  func.func @resblock_kernel(%arg0: i32, %arg1: i32, %arg2: memref<1x8x16x4xf32, #tpu.memory_space<vmem>>, %arg3: memref<1x1x16x4xf32, #tpu.memory_space<vmem>>, %arg4: memref<1x1x16x4xf32, #tpu.memory_space<vmem>>, %arg5: memref<4x4xbf16, #tpu.memory_space<vmem>>, %arg6: memref<1x4xf32, #tpu.memory_space<vmem>>, %arg7: memref<1x4xf32, #tpu.memory_space<vmem>>, %arg8: memref<9x4x4xbf16, #tpu.memory_space<vmem>>, %arg9: memref<1x4xf32, #tpu.memory_space<vmem>>, %arg10: memref<1x4xf32, #tpu.memory_space<vmem>>, %arg11: memref<1x8x16x4xf32, #tpu.memory_space<vmem>>) attributes {dimension_semantics = [#tpu.dimension_semantics<parallel>, #tpu.dimension_semantics<parallel>], iteration_bounds = array<i64: 2, 2>, scalar_prefetch = 0 : i64, scratch_operands = 0 : i64, tpu.core_type = #tpu.core_type<tc>, window_params = [{transform_indices = @transform_0, window_bounds = array<i64: 1, 8, 16, 4>}, {transform_indices = @transform_1, window_bounds = array<i64: 1, 1, 16, 4>}, {transform_indices = @transform_2, window_bounds = array<i64: 1, 1, 16, 4>}, {pipeline_mode = #tpu.pipeline_mode<synchronous>, transform_indices = @transform_3, window_bounds = array<i64: 4, 4>}, {pipeline_mode = #tpu.pipeline_mode<synchronous>, transform_indices = @transform_4, window_bounds = array<i64: 1, 4>}, {pipeline_mode = #tpu.pipeline_mode<synchronous>, transform_indices = @transform_5, window_bounds = array<i64: 1, 4>}, {pipeline_mode = #tpu.pipeline_mode<synchronous>, transform_indices = @transform_6, window_bounds = array<i64: 9, 4, 4>}, {pipeline_mode = #tpu.pipeline_mode<synchronous>, transform_indices = @transform_7, window_bounds = array<i64: 1, 4>}, {pipeline_mode = #tpu.pipeline_mode<synchronous>, transform_indices = @transform_8, window_bounds = array<i64: 1, 4>}, {transform_indices = @transform_9, window_bounds = array<i64: 1, 8, 16, 4>}]} {
    %c0_i32 = arith.constant 0 : i32
    %0 = arith.cmpi sgt, %arg1, %c0_i32 : i32
    %c1_i32 = arith.constant 1 : i32
    %1 = arith.cmpi slt, %arg1, %c1_i32 : i32
    %c0 = arith.constant 0 : index
    %c0_0 = arith.constant 0 : index
    %c0_1 = arith.constant 0 : index
    %c0_2 = arith.constant 0 : index
    %2 = vector.load %arg3[%c0, %c0_0, %c0_1, %c0_2] : memref<1x1x16x4xf32, #tpu.memory_space<vmem>>, vector<1x1x16x4xf32>
    %3 = vector.shape_cast %2 : vector<1x1x16x4xf32> to vector<1x16x4xf32>
    %c0_3 = arith.constant 0 : index
    %c0_4 = arith.constant 0 : index
    %c0_5 = arith.constant 0 : index
    %c0_6 = arith.constant 0 : index
    %4 = vector.load %arg2[%c0_3, %c0_4, %c0_5, %c0_6] : memref<1x8x16x4xf32, #tpu.memory_space<vmem>>, vector<1x8x16x4xf32>
    %5 = vector.shape_cast %4 : vector<1x8x16x4xf32> to vector<8x16x4xf32>
    %c0_7 = arith.constant 0 : index
    %c0_8 = arith.constant 0 : index
    %c0_9 = arith.constant 0 : index
    %c0_10 = arith.constant 0 : index
    %6 = vector.load %arg4[%c0_7, %c0_8, %c0_9, %c0_10] : memref<1x1x16x4xf32, #tpu.memory_space<vmem>>, vector<1x1x16x4xf32>
    %7 = vector.shape_cast %6 : vector<1x1x16x4xf32> to vector<1x16x4xf32>
    %8 = tpu.concatenate %3, %5, %7 in 0 : vector<1x16x4xf32>, vector<8x16x4xf32>, vector<1x16x4xf32> -> vector<10x16x4xf32>
    %9 = vector.shape_cast %8 : vector<10x16x4xf32> to vector<160x4xf32>
    %10 = arith.truncf %9 : vector<160x4xf32> to vector<160x4xbf16>
    %c0_11 = arith.constant 0 : index
    %c0_12 = arith.constant 0 : index
    %11 = vector.load %arg5[%c0_11, %c0_12] : memref<4x4xbf16, #tpu.memory_space<vmem>>, vector<4x4xbf16>
    %cst = arith.constant dense<0.000000e+00> : vector<160x4xf32>
    %12 = tpu.matmul %10, %11, %cst {dimension_numbers = #tpu.dot_dimension_numbers<[1], [0], [0], [1], [0, 0, 1, 1], [], []>} : vector<160x4xbf16>, vector<4x4xbf16>, vector<160x4xf32> -> vector<160x4xf32>
    %c0_13 = arith.constant 0 : index
    %c0_14 = arith.constant 0 : index
    %13 = vector.load %arg6[%c0_13, %c0_14] : memref<1x4xf32, #tpu.memory_space<vmem>>, vector<1x4xf32>
    %14 = vector.broadcast %13 : vector<1x4xf32> to vector<160x4xf32>
    %15 = arith.mulf %12, %14 : vector<160x4xf32>
    %c0_15 = arith.constant 0 : index
    %c0_16 = arith.constant 0 : index
    %16 = vector.load %arg7[%c0_15, %c0_16] : memref<1x4xf32, #tpu.memory_space<vmem>>, vector<1x4xf32>
    %17 = vector.broadcast %16 : vector<1x4xf32> to vector<160x4xf32>
    %18 = arith.addf %15, %17 : vector<160x4xf32>
    %cst_17 = arith.constant 2.000000e+01 : f32
    %19 = vector.broadcast %cst_17 : f32 to vector<160x4xf32>
    %20 = arith.minimumf %18, %19 : vector<160x4xf32>
    %21 = math.exp %20 : vector<160x4xf32>
    %cst_18 = arith.constant 2.000000e+00 : f32
    %22 = vector.broadcast %cst_18 : f32 to vector<160x4xf32>
    %23 = arith.addf %21, %22 : vector<160x4xf32>
    %24 = arith.mulf %21, %23 : vector<160x4xf32>
    %25 = arith.mulf %18, %24 : vector<160x4xf32>
    %cst_19 = arith.constant 2.000000e+00 : f32
    %26 = vector.broadcast %cst_19 : f32 to vector<160x4xf32>
    %27 = arith.addf %24, %26 : vector<160x4xf32>
    %28 = tpu.reciprocal %27 {approx = true} : vector<160x4xf32> -> vector<160x4xf32>
    %29 = arith.mulf %25, %28 : vector<160x4xf32>
    %cst_20 = arith.constant 2.000000e+01 : f32
    %30 = vector.broadcast %cst_20 : f32 to vector<160x4xf32>
    %31 = arith.cmpf ogt, %18, %30 : vector<160x4xf32>
    %32 = arith.select %31, %18, %29 : vector<160x4xi1>, vector<160x4xf32>
    %33 = tpu.iota {dimensions = array<i32: 0>} : vector<10x16x4xi32>
    %34 = vector.shape_cast %33 : vector<10x16x4xi32> to vector<160x4xi32>
    %35 = tpu.iota {dimensions = array<i32: 1>} : vector<10x16x4xi32>
    %36 = vector.shape_cast %35 : vector<10x16x4xi32> to vector<160x4xi32>
    %c0_i32_21 = arith.constant 0 : i32
    %37 = vector.broadcast %c0_i32_21 : i32 to vector<160x4xi32>
    %38 = arith.cmpi sgt, %34, %37 : vector<160x4xi32>
    %39 = vector.broadcast %0 : i1 to vector<160x4xi1>
    %40 = arith.ori %38, %39 : vector<160x4xi1>
    %c9_i32 = arith.constant 9 : i32
    %41 = vector.broadcast %c9_i32 : i32 to vector<160x4xi32>
    %42 = arith.cmpi slt, %34, %41 : vector<160x4xi32>
    %43 = vector.broadcast %1 : i1 to vector<160x4xi1>
    %44 = arith.ori %42, %43 : vector<160x4xi1>
    %45 = arith.andi %40, %44 : vector<160x4xi1>
    %cst_22 = arith.constant 0.000000e+00 : f32
    %46 = vector.broadcast %cst_22 : f32 to vector<160x4xf32>
    %47 = arith.select %45, %32, %46 : vector<160x4xi1>, vector<160x4xf32>
    %cst_23 = arith.constant 0.000000e+00 : f32
    %48 = vector.broadcast %cst_23 : f32 to vector<1x4xf32>
    %49 = vector.extract_strided_slice %47 {offsets = [0, 0], sizes = [159, 4], strides = [1, 1]} : vector<160x4xf32> to vector<159x4xf32>
    %50 = tpu.concatenate %48, %49 in 0 : vector<1x4xf32>, vector<159x4xf32> -> vector<160x4xf32>
    %51 = vector.extract_strided_slice %47 {offsets = [1, 0], sizes = [159, 4], strides = [1, 1]} : vector<160x4xf32> to vector<159x4xf32>
    %52 = tpu.concatenate %51, %48 in 0 : vector<159x4xf32>, vector<1x4xf32> -> vector<160x4xf32>
    %c0_i32_24 = arith.constant 0 : i32
    %53 = vector.broadcast %c0_i32_24 : i32 to vector<160x4xi32>
    %54 = arith.cmpi sgt, %36, %53 : vector<160x4xi32>
    %cst_25 = arith.constant 0.000000e+00 : f32
    %55 = vector.broadcast %cst_25 : f32 to vector<160x4xf32>
    %56 = arith.select %54, %50, %55 : vector<160x4xi1>, vector<160x4xf32>
    %c15_i32 = arith.constant 15 : i32
    %57 = vector.broadcast %c15_i32 : i32 to vector<160x4xi32>
    %58 = arith.cmpi slt, %36, %57 : vector<160x4xi32>
    %cst_26 = arith.constant 0.000000e+00 : f32
    %59 = vector.broadcast %cst_26 : f32 to vector<160x4xf32>
    %60 = arith.select %58, %52, %59 : vector<160x4xi1>, vector<160x4xf32>
    %61 = arith.truncf %56 : vector<160x4xf32> to vector<160x4xbf16>
    %62 = arith.truncf %47 : vector<160x4xf32> to vector<160x4xbf16>
    %63 = arith.truncf %60 : vector<160x4xf32> to vector<160x4xbf16>
    %64 = vector.extract_strided_slice %61 {offsets = [0, 0], sizes = [128, 4], strides = [1, 1]} : vector<160x4xbf16> to vector<128x4xbf16>
    %c0_27 = arith.constant 0 : index
    %c0_28 = arith.constant 0 : index
    %c0_29 = arith.constant 0 : index
    %65 = vector.load %arg8[%c0_27, %c0_28, %c0_29] : memref<9x4x4xbf16, #tpu.memory_space<vmem>>, vector<1x4x4xbf16>
    %66 = vector.shape_cast %65 : vector<1x4x4xbf16> to vector<4x4xbf16>
    %cst_30 = arith.constant dense<0.000000e+00> : vector<128x4xf32>
    %67 = tpu.matmul %64, %66, %cst_30 {dimension_numbers = #tpu.dot_dimension_numbers<[1], [0], [0], [1], [0, 0, 1, 1], [], []>} : vector<128x4xbf16>, vector<4x4xbf16>, vector<128x4xf32> -> vector<128x4xf32>
    %68 = vector.extract_strided_slice %62 {offsets = [0, 0], sizes = [128, 4], strides = [1, 1]} : vector<160x4xbf16> to vector<128x4xbf16>
    %c1 = arith.constant 1 : index
    %c0_31 = arith.constant 0 : index
    %c0_32 = arith.constant 0 : index
    %69 = vector.load %arg8[%c1, %c0_31, %c0_32] : memref<9x4x4xbf16, #tpu.memory_space<vmem>>, vector<1x4x4xbf16>
    %70 = vector.shape_cast %69 : vector<1x4x4xbf16> to vector<4x4xbf16>
    %cst_33 = arith.constant dense<0.000000e+00> : vector<128x4xf32>
    %71 = tpu.matmul %68, %70, %cst_33 {dimension_numbers = #tpu.dot_dimension_numbers<[1], [0], [0], [1], [0, 0, 1, 1], [], []>} : vector<128x4xbf16>, vector<4x4xbf16>, vector<128x4xf32> -> vector<128x4xf32>
    %72 = arith.addf %67, %71 : vector<128x4xf32>
    %73 = vector.extract_strided_slice %63 {offsets = [0, 0], sizes = [128, 4], strides = [1, 1]} : vector<160x4xbf16> to vector<128x4xbf16>
    %c2 = arith.constant 2 : index
    %c0_34 = arith.constant 0 : index
    %c0_35 = arith.constant 0 : index
    %74 = vector.load %arg8[%c2, %c0_34, %c0_35] : memref<9x4x4xbf16, #tpu.memory_space<vmem>>, vector<1x4x4xbf16>
    %75 = vector.shape_cast %74 : vector<1x4x4xbf16> to vector<4x4xbf16>
    %cst_36 = arith.constant dense<0.000000e+00> : vector<128x4xf32>
    %76 = tpu.matmul %73, %75, %cst_36 {dimension_numbers = #tpu.dot_dimension_numbers<[1], [0], [0], [1], [0, 0, 1, 1], [], []>} : vector<128x4xbf16>, vector<4x4xbf16>, vector<128x4xf32> -> vector<128x4xf32>
    %77 = arith.addf %72, %76 : vector<128x4xf32>
    %78 = vector.extract_strided_slice %61 {offsets = [16, 0], sizes = [128, 4], strides = [1, 1]} : vector<160x4xbf16> to vector<128x4xbf16>
    %c3 = arith.constant 3 : index
    %c0_37 = arith.constant 0 : index
    %c0_38 = arith.constant 0 : index
    %79 = vector.load %arg8[%c3, %c0_37, %c0_38] : memref<9x4x4xbf16, #tpu.memory_space<vmem>>, vector<1x4x4xbf16>
    %80 = vector.shape_cast %79 : vector<1x4x4xbf16> to vector<4x4xbf16>
    %cst_39 = arith.constant dense<0.000000e+00> : vector<128x4xf32>
    %81 = tpu.matmul %78, %80, %cst_39 {dimension_numbers = #tpu.dot_dimension_numbers<[1], [0], [0], [1], [0, 0, 1, 1], [], []>} : vector<128x4xbf16>, vector<4x4xbf16>, vector<128x4xf32> -> vector<128x4xf32>
    %82 = arith.addf %77, %81 : vector<128x4xf32>
    %83 = vector.extract_strided_slice %62 {offsets = [16, 0], sizes = [128, 4], strides = [1, 1]} : vector<160x4xbf16> to vector<128x4xbf16>
    %c4 = arith.constant 4 : index
    %c0_40 = arith.constant 0 : index
    %c0_41 = arith.constant 0 : index
    %84 = vector.load %arg8[%c4, %c0_40, %c0_41] : memref<9x4x4xbf16, #tpu.memory_space<vmem>>, vector<1x4x4xbf16>
    %85 = vector.shape_cast %84 : vector<1x4x4xbf16> to vector<4x4xbf16>
    %cst_42 = arith.constant dense<0.000000e+00> : vector<128x4xf32>
    %86 = tpu.matmul %83, %85, %cst_42 {dimension_numbers = #tpu.dot_dimension_numbers<[1], [0], [0], [1], [0, 0, 1, 1], [], []>} : vector<128x4xbf16>, vector<4x4xbf16>, vector<128x4xf32> -> vector<128x4xf32>
    %87 = arith.addf %82, %86 : vector<128x4xf32>
    %88 = vector.extract_strided_slice %63 {offsets = [16, 0], sizes = [128, 4], strides = [1, 1]} : vector<160x4xbf16> to vector<128x4xbf16>
    %c5 = arith.constant 5 : index
    %c0_43 = arith.constant 0 : index
    %c0_44 = arith.constant 0 : index
    %89 = vector.load %arg8[%c5, %c0_43, %c0_44] : memref<9x4x4xbf16, #tpu.memory_space<vmem>>, vector<1x4x4xbf16>
    %90 = vector.shape_cast %89 : vector<1x4x4xbf16> to vector<4x4xbf16>
    %cst_45 = arith.constant dense<0.000000e+00> : vector<128x4xf32>
    %91 = tpu.matmul %88, %90, %cst_45 {dimension_numbers = #tpu.dot_dimension_numbers<[1], [0], [0], [1], [0, 0, 1, 1], [], []>} : vector<128x4xbf16>, vector<4x4xbf16>, vector<128x4xf32> -> vector<128x4xf32>
    %92 = arith.addf %87, %91 : vector<128x4xf32>
    %93 = vector.extract_strided_slice %61 {offsets = [32, 0], sizes = [128, 4], strides = [1, 1]} : vector<160x4xbf16> to vector<128x4xbf16>
    %c6 = arith.constant 6 : index
    %c0_46 = arith.constant 0 : index
    %c0_47 = arith.constant 0 : index
    %94 = vector.load %arg8[%c6, %c0_46, %c0_47] : memref<9x4x4xbf16, #tpu.memory_space<vmem>>, vector<1x4x4xbf16>
    %95 = vector.shape_cast %94 : vector<1x4x4xbf16> to vector<4x4xbf16>
    %cst_48 = arith.constant dense<0.000000e+00> : vector<128x4xf32>
    %96 = tpu.matmul %93, %95, %cst_48 {dimension_numbers = #tpu.dot_dimension_numbers<[1], [0], [0], [1], [0, 0, 1, 1], [], []>} : vector<128x4xbf16>, vector<4x4xbf16>, vector<128x4xf32> -> vector<128x4xf32>
    %97 = arith.addf %92, %96 : vector<128x4xf32>
    %98 = vector.extract_strided_slice %62 {offsets = [32, 0], sizes = [128, 4], strides = [1, 1]} : vector<160x4xbf16> to vector<128x4xbf16>
    %c7 = arith.constant 7 : index
    %c0_49 = arith.constant 0 : index
    %c0_50 = arith.constant 0 : index
    %99 = vector.load %arg8[%c7, %c0_49, %c0_50] : memref<9x4x4xbf16, #tpu.memory_space<vmem>>, vector<1x4x4xbf16>
    %100 = vector.shape_cast %99 : vector<1x4x4xbf16> to vector<4x4xbf16>
    %cst_51 = arith.constant dense<0.000000e+00> : vector<128x4xf32>
    %101 = tpu.matmul %98, %100, %cst_51 {dimension_numbers = #tpu.dot_dimension_numbers<[1], [0], [0], [1], [0, 0, 1, 1], [], []>} : vector<128x4xbf16>, vector<4x4xbf16>, vector<128x4xf32> -> vector<128x4xf32>
    %102 = arith.addf %97, %101 : vector<128x4xf32>
    %103 = vector.extract_strided_slice %63 {offsets = [32, 0], sizes = [128, 4], strides = [1, 1]} : vector<160x4xbf16> to vector<128x4xbf16>
    %c8 = arith.constant 8 : index
    %c0_52 = arith.constant 0 : index
    %c0_53 = arith.constant 0 : index
    %104 = vector.load %arg8[%c8, %c0_52, %c0_53] : memref<9x4x4xbf16, #tpu.memory_space<vmem>>, vector<1x4x4xbf16>
    %105 = vector.shape_cast %104 : vector<1x4x4xbf16> to vector<4x4xbf16>
    %cst_54 = arith.constant dense<0.000000e+00> : vector<128x4xf32>
    %106 = tpu.matmul %103, %105, %cst_54 {dimension_numbers = #tpu.dot_dimension_numbers<[1], [0], [0], [1], [0, 0, 1, 1], [], []>} : vector<128x4xbf16>, vector<4x4xbf16>, vector<128x4xf32> -> vector<128x4xf32>
    %107 = arith.addf %102, %106 : vector<128x4xf32>
    %c0_55 = arith.constant 0 : index
    %c0_56 = arith.constant 0 : index
    %108 = vector.load %arg9[%c0_55, %c0_56] : memref<1x4xf32, #tpu.memory_space<vmem>>, vector<1x4xf32>
    %109 = vector.broadcast %108 : vector<1x4xf32> to vector<128x4xf32>
    %110 = arith.mulf %107, %109 : vector<128x4xf32>
    %c0_57 = arith.constant 0 : index
    %c0_58 = arith.constant 0 : index
    %111 = vector.load %arg10[%c0_57, %c0_58] : memref<1x4xf32, #tpu.memory_space<vmem>>, vector<1x4xf32>
    %112 = vector.broadcast %111 : vector<1x4xf32> to vector<128x4xf32>
    %113 = arith.addf %110, %112 : vector<128x4xf32>
    %cst_59 = arith.constant 2.000000e+01 : f32
    %114 = vector.broadcast %cst_59 : f32 to vector<128x4xf32>
    %115 = arith.minimumf %113, %114 : vector<128x4xf32>
    %116 = math.exp %115 : vector<128x4xf32>
    %cst_60 = arith.constant 2.000000e+00 : f32
    %117 = vector.broadcast %cst_60 : f32 to vector<128x4xf32>
    %118 = arith.addf %116, %117 : vector<128x4xf32>
    %119 = arith.mulf %116, %118 : vector<128x4xf32>
    %120 = arith.mulf %113, %119 : vector<128x4xf32>
    %cst_61 = arith.constant 2.000000e+00 : f32
    %121 = vector.broadcast %cst_61 : f32 to vector<128x4xf32>
    %122 = arith.addf %119, %121 : vector<128x4xf32>
    %123 = tpu.reciprocal %122 {approx = true} : vector<128x4xf32> -> vector<128x4xf32>
    %124 = arith.mulf %120, %123 : vector<128x4xf32>
    %cst_62 = arith.constant 2.000000e+01 : f32
    %125 = vector.broadcast %cst_62 : f32 to vector<128x4xf32>
    %126 = arith.cmpf ogt, %113, %125 : vector<128x4xf32>
    %127 = arith.select %126, %113, %124 : vector<128x4xi1>, vector<128x4xf32>
    %128 = vector.extract_strided_slice %9 {offsets = [16, 0], sizes = [128, 4], strides = [1, 1]} : vector<160x4xf32> to vector<128x4xf32>
    %129 = arith.addf %128, %127 : vector<128x4xf32>
    %130 = vector.shape_cast %129 : vector<128x4xf32> to vector<8x16x4xf32>
    %c0_63 = arith.constant 0 : index
    %c0_64 = arith.constant 0 : index
    %c0_65 = arith.constant 0 : index
    %c0_66 = arith.constant 0 : index
    %131 = vector.load %arg11[%c0_63, %c0_64, %c0_65, %c0_66] : memref<1x8x16x4xf32, #tpu.memory_space<vmem>>, vector<1x8x16x4xf32>
    %132 = vector.shape_cast %131 : vector<1x8x16x4xf32> to vector<8x16x4xf32>
    %133 = vector.shape_cast %130 : vector<8x16x4xf32> to vector<1x8x16x4xf32>
    tpu.vector_store %arg11[%c0_63, %c0_64, %c0_65, %c0_66], %133 {strides = array<i32>} : memref<1x8x16x4xf32, #tpu.memory_space<vmem>>, vector<1x8x16x4xf32>,
    return
  }
  func.func @transform_0(%arg0: i32, %arg1: i32) -> (i32, i32, i32, i32) {
    %c0_i32 = arith.constant 0 : i32
    %c0_i32_0 = arith.constant 0 : i32
    %c0_i32_1 = arith.constant 0 : i32
    return %arg0, %arg1, %c0_i32, %c0_i32_0 : i32, i32, i32, i32
  }
  func.func @transform_1(%arg0: i32, %arg1: i32) -> (i32, i32, i32, i32) {
    %c8_i32 = arith.constant 8 : i32
    %0 = arith.muli %arg1, %c8_i32 : i32
    %c1_i32 = arith.constant 1 : i32
    %1 = arith.subi %0, %c1_i32 : i32
    %c0_i32 = arith.constant 0 : i32
    %2 = arith.maxsi %1, %c0_i32 : i32
    %c0_i32_0 = arith.constant 0 : i32
    %c0_i32_1 = arith.constant 0 : i32
    %c0_i32_2 = arith.constant 0 : i32
    return %arg0, %2, %c0_i32_0, %c0_i32_1 : i32, i32, i32, i32
  }
  func.func @transform_2(%arg0: i32, %arg1: i32) -> (i32, i32, i32, i32) {
    %c1_i32 = arith.constant 1 : i32
    %0 = arith.addi %arg1, %c1_i32 : i32
    %c8_i32 = arith.constant 8 : i32
    %1 = arith.muli %0, %c8_i32 : i32
    %c15_i32 = arith.constant 15 : i32
    %2 = arith.minsi %1, %c15_i32 : i32
    %c0_i32 = arith.constant 0 : i32
    %c0_i32_0 = arith.constant 0 : i32
    %c0_i32_1 = arith.constant 0 : i32
    return %arg0, %2, %c0_i32, %c0_i32_0 : i32, i32, i32, i32
  }
  func.func @transform_3(%arg0: i32, %arg1: i32) -> (i32, i32) {
    %c0_i32 = arith.constant 0 : i32
    %c0_i32_0 = arith.constant 0 : i32
    %c0_i32_1 = arith.constant 0 : i32
    return %c0_i32, %c0_i32_0 : i32, i32
  }
  func.func @transform_4(%arg0: i32, %arg1: i32) -> (i32, i32) {
    %c0_i32 = arith.constant 0 : i32
    %c0_i32_0 = arith.constant 0 : i32
    %c0_i32_1 = arith.constant 0 : i32
    return %c0_i32, %c0_i32_0 : i32, i32
  }
  func.func @transform_5(%arg0: i32, %arg1: i32) -> (i32, i32) {
    %c0_i32 = arith.constant 0 : i32
    %c0_i32_0 = arith.constant 0 : i32
    %c0_i32_1 = arith.constant 0 : i32
    return %c0_i32, %c0_i32_0 : i32, i32
  }
  func.func @transform_6(%arg0: i32, %arg1: i32) -> (i32, i32, i32) {
    %c0_i32 = arith.constant 0 : i32
    %c0_i32_0 = arith.constant 0 : i32
    %c0_i32_1 = arith.constant 0 : i32
    %c0_i32_2 = arith.constant 0 : i32
    return %c0_i32, %c0_i32_0, %c0_i32_1 : i32, i32, i32
  }
  func.func @transform_7(%arg0: i32, %arg1: i32) -> (i32, i32) {
    %c0_i32 = arith.constant 0 : i32
    %c0_i32_0 = arith.constant 0 : i32
    %c0_i32_1 = arith.constant 0 : i32
    return %c0_i32, %c0_i32_0 : i32, i32
  }
  func.func @transform_8(%arg0: i32, %arg1: i32) -> (i32, i32) {
    %c0_i32 = arith.constant 0 : i32
    %c0_i32_0 = arith.constant 0 : i32
    %c0_i32_1 = arith.constant 0 : i32
    return %c0_i32, %c0_i32_0 : i32, i32
  }
  func.func @transform_9(%arg0: i32, %arg1: i32) -> (i32, i32, i32, i32) {
    %c0_i32 = arith.constant 0 : i32
    %c0_i32_0 = arith.constant 0 : i32
    %c0_i32_1 = arith.constant 0 : i32
    return %arg0, %arg1, %c0_i32, %c0_i32_0 : i32, i32, i32, i32
  }
}

</mosaic_0001>

<bundles_post_ra>
// kernel: tpu_custom_call.1
= control target key start
LH: loop header
LB: loop body
LE: loop exit
PB: predicated region body
PF: predicated region fallthrough
CT: control target
= control target key end

     0   :  { %s3416_s30 = smov 0   ;;  %s3418_s10 = smov 0   ;;  %s4729_s0 = inlined_call_operand.vmem [shape: f32[2,16,16,4], index: 0, kind: input, shape index: {}]   ;;  %s4730_s1 = inlined_call_operand.vmem [shape: f32[2,16,16,4], index: 1, kind: input, shape index: {}]   ;;  %s4731_s2 = inlined_call_operand.vmem [shape: f32[2,16,16,4], index: 2, kind: input, shape index: {}]   ;;  %s4732_s3 = inlined_call_operand.vmem [shape: bf16[4,4], index: 3, kind: input, shape index: {}]   ;;  %s4733_s4 = inlined_call_operand.vmem [shape: f32[1,4], index: 4, kind: input, shape index: {}]   ;;  %s4734_s5 = inlined_call_operand.vmem [shape: f32[1,4], index: 5, kind: input, shape index: {}]   ;;  %s4735_s6 = inlined_call_operand.vmem [shape: bf16[9,4,4], index: 6, kind: input, shape index: {}]   ;;  %s4736_s7 = inlined_call_operand.vmem [shape: f32[1,4], index: 7, kind: input, shape index: {}]   ;;  %s4737_s8 = inlined_call_operand.vmem [shape: f32[1,4], index: 8, kind: input, shape index: {}]   ;;  %s4738_s9 = inlined_call_operand.vmem [shape: f32[2,16,16,4], index: 9, kind: output, shape index: {}]  }
   0x1   :  { %s3420_s11 = smov 0   ;;  %s3422_s12 = smov 0  }
   0x2   :  { %s3424_s13 = smov 0  }
   0x3 LB: > { %s28_s14 = sadd.s32 1, %s3356_s11  ;;  %s31_s15 = sadd.s32 1, %s3360_s12  ;;  %s3364_s13 = sphi %s3424_s13, %s19_s13   ;;  %s3360_s12 = sphi %s3422_s12, %s4787_s12   ;;  %s3356_s11 = sphi %s3420_s11, %s4786_s11   ;;  %s3352_s10 = sphi %s3418_s10, %s4785_s10   ;;  %s3348_s30 = sphi %s3416_s30, %s4784_s30  }
   0x4   : > { %p29_p0 = scmp.ge.s32.totalorder %s28_s14, 2  ;;  %p2710_p1 = scmp.ge.s32.totalorder %s3364_s13, 1 }
   0x5   : > { %p373_p2 = scmp.lt.s32.totalorder %s3364_s13, 5 }
   0x6   : > { %s4789_s14 = smov (%p29_p0, %s28_s14), 0  ;;  %s4791_s15 = smov (!%p29_p0, %s31_s15), %s3360_s12 }
   0x7   : > { %p374_p3 = pnand %p2710_p1, %p373_p2  ;;  %p33_p4 = scmp.ge.s32.totalorder %s4791_s15, 2 }
   0x9   : > { %s4793_s15 = smov (%p33_p4, %s4791_s15), 0  ;;  %377 = sbr.rel (%p374_p3) target bundleno = 712 (0x2c8), region = 56 }
   0xe   : > { %v534_v0 = vld [vmem:[%s4732_s3] sm:$0x3]  ;;  %vm566_vm0 = vcmask 1041408   ;;  %s3452_s18 = sshll.u32 %s3348_s30, 3  ;;  %p446_p5 = scmp.lt.s32.totalorder %s3352_s10, 1  ;;  %vm535_vm1 = vcmask 31744  }
   0xf   : > { %3116 = vmatprep.subr.msk.bf16.mxu0 %vm566_vm0, %v534_v0  ;;  %v568_v1 = vsel %vm566_vm0, %v534_v0, 0  ;;  %p448_p6 = scmp.lt.s32.totalorder %s3452_s18, 15  ;;  %s2716_s19 = sadd.s32 4294967295, %s3452_s18  ;;  %v2748_v32 = vld [vmem:[%s4735_s6 + $0x2] sm:$0x3]  ;;  %vm1051_vm7 = vcmask 1046528  }
  0x10   : > { %2933 = vmatpush3.bf16.msra.mxu0 %v568_v1  ;;  %s4795_s10 = smov (!%p446_p5, %s3352_s10), 1  ;;  %p458_p7 = scmp.gt.s32.totalorder %s2716_s19, 0  ;;  %3117 = vmatprep.subr.msk.bf16.mxu1 %vm566_vm0, %v2748_v32  ;;  %v1214_v33 = vsel %vm566_vm0, %v2748_v32, 0  ;;  %v2765_v34 = vld [vmem:[%s4735_s6 + $0x4] sm:$0x3] }
  0x11   : > { %s449_s20 = scalar_select %p448_p6, %s3452_s18, 15  ;;  %2955 = vmatpush3.bf16.msra.mxu1 %v1214_v33  ;;  %3119 = vmatprep.subr.msk.bf16.mxu0 %vm566_vm0, %v2765_v34  ;;  %v1464_v35 = vsel %vm566_vm0, %v2765_v34, 0  ;;  %v3528_v36 = vld [vmem:[%s4735_s6] sm:$0x3]  ;;  %v3535_v37 = vld [vmem:[%s4735_s6 + $0x8] sm:$0x3] }
  0x12   : > { %s3459_s21 = sshll.u32 %s4795_s10, 5  ;;  %p2717_p8 = scmp.lt.s32.totalorder %s2716_s19, 15  ;;  %3118 = vmatprep.subr.msk.bf16.mxu1 %vm566_vm0, %v3528_v36  ;;  %v3542_v38 = vld [vmem:[%s4733_s4] ss:$0 sm:$0xff] }
  0x13   : > { %s2712_s22 = sshll.u32 %s449_s20, 1  ;;  %s4797_s19 = smov (!%p458_p7, %s2716_s19), 0  ;;  %v3547_v40 = vld [vmem:[%s4734_s5] ss:$0 sm:$0xff] }
  0x14   : > { %s3462_s23 = sadd.s32 %s3459_s21, %s2712_s22  ;;  %s4799_s19 = smov (!%p2717_p8, %s4797_s19), 15 }
  0x15   : > { %s2714_s24 = sshll.u32 %s3462_s23, 3  ;;  %s2722_s28 = sshll.u32 %s4799_s19, 1 }
  0x16   : > { %s3470_s27 = scalar_lea.vmem %s4729_s0, %s2714_s24  ;;  %s466_s29 = sadd.s32 %s2722_s28, %s3459_s21 }
  0x17   : > { %v506_v2 = vld [vmem:[%s3470_s27] sm:$0xff]  ;;  %v507_v3 = vld [vmem:[%s3470_s27 + $0x8] sm:$0xff]  ;;  %s2724_s10 = sshll.u32 %s466_s29, 3  ;;  %v508_v4 = vld [vmem:[%s3470_s27 + $0x10] sm:$0xff]  ;;  %s2839_s19 = sadd.s32 8, %s3452_s18 }
  0x18   : > { %v509_v5 = vld [vmem:[%s3470_s27 + $0x18] sm:$0xff]  ;;  %s468_s20 = scalar_lea.vmem %s4730_s1, %s2724_s10  ;;  %v525_v8 = vpack.c.bf16 %v507_v3, %v506_v2  ;;  %p3483_p9 = scmp.lt.s32.totalorder %s2839_s19, 15  ;;  %v510_v11 = vld [vmem:[%s3470_s27 + $0x20] sm:$0xff]  ;;  %v511_v12 = vld [vmem:[%s3470_s27 + $0x28] sm:$0xff] }
  0x19   : > { %v504_v6 = vld [vmem:[%s468_s20] sm:$0xff]  ;;  %v505_v7 = vld [vmem:[%s468_s20 + $0x8] sm:$0xff]  ;;  %v526_v10 = vpack.c.bf16 %v509_v5, %v508_v4  ;;  %v512_v13 = vld [vmem:[%s3470_s27 + $0x30] sm:$0xff]  ;;  %v527_v15 = vpack.c.bf16 %v511_v12, %v510_v11  ;;  %p502_p10 = scmp.gt.s32.totalorder %s3348_s30, 0  ;;  %p503_p11 = scmp.lt.s32.totalorder %s3348_s30, 1 }
  0x1a   : > { %v524_v9 = vpack.c.bf16 %v505_v7, %v504_v6  ;;  %v513_v14 = vld [vmem:[%s3470_s27 + $0x38] sm:$0xff]  ;;  %s4801_s19 = smov (!%p3483_p9, %s2839_s19), 15  ;;  %v514_v17 = vld [vmem:[%s3470_s27 + $0x40] sm:$0xff]  ;;  %v515_v18 = vld [vmem:[%s3470_s27 + $0x48] sm:$0xff] }
  0x1b   : > { %v528_v16 = vpack.c.bf16 %v513_v14, %v512_v13  ;;  %s4803_s19 = smov (!%p3483_p9, %s4801_s19), 15  ;;  %v516_v19 = vld [vmem:[%s3470_s27 + $0x50] sm:$0xff]  ;;  %v517_v20 = vld [vmem:[%s3470_s27 + $0x58] sm:$0xff]  ;;  %v529_v21 = vpack.c.bf16 %v515_v18, %v514_v17  ;;  %v518_v23 = vld [vmem:[%s3470_s27 + $0x60] sm:$0xff] }
  0x1c   : > { %2934 = vmatprep.mubr.msk.bf16.mxu0 %vm535_vm1, %v524_v9  ;;  %s2729_s18 = sshll.u32 %s4803_s19, 1  ;;  %v530_v22 = vpack.c.bf16 %v517_v20, %v516_v19  ;;  %v519_v24 = vld [vmem:[%s3470_s27 + $0x68] sm:$0xff]  ;;  %v520_v25 = vld [vmem:[%s3470_s27 + $0x70] sm:$0xff]  ;;  %v521_v26 = vld [vmem:[%s3470_s27 + $0x78] sm:$0xff]  ;;  %s4590_s19 = scalar_lea.vmem %s4738_s9, %s2714_s24 }
  0x1d   : > { %2935 = vmatmul.mubr.msk.bf16.vlgmr.msra.gmra.mxu0 %vm535_vm1, %v525_v8  ;;  %s483_s25 = sadd.s32 %s2729_s18, %s3459_s21  ;;  %v531_v27 = vpack.c.bf16 %v519_v24, %v518_v23  ;;  %v532_v28 = vpack.c.bf16 %v521_v26, %v520_v25 }
  0x1e   : > { %2938 = vmatprep.mubr.msk.bf16.mxu0 %vm535_vm1, %v526_v10  ;;  %s2731_s26 = sshll.u32 %s483_s25, 3  ;;  %2991 = vmatpush3.bf16.msra.mxu0 %v1464_v35 }
  0x1f   : > { %s485_s10 = scalar_lea.vmem %s4731_s2, %s2731_s26  ;;  %3121 = vmatprep.subr.msk.bf16.mxu0 %vm566_vm0, %v3535_v37 }
  0x20   : > { %v522_v29 = vld [vmem:[%s485_s10] sm:$0xff]  ;;  %v523_v30 = vld [vmem:[%s485_s10 + $0x8] sm:$0xff]  ;;  %s3634_s21 = scalar_select %p502_p10, 1, 0 }
  0x21   : > { %v533_v31 = vpack.c.bf16 %v523_v30, %v522_v29  ;;  %s3652_s16 = scalar_select %p503_p11, 1, 0 }
  0x25   : > { %2939 = vmatmul.mubr.msk.bf16.gmra.mxu0 %vm535_vm1, %v527_v15 }
  0x26   : > { %2942 = vmatprep.mubr.msk.bf16.mxu0 %vm535_vm1, %v528_v16 }
  0x2d   : > { %2943 = vmatmul.mubr.msk.bf16.gmra.mxu0 %vm535_vm1, %v529_v21 }
  0x2e   : > { %2946 = vmatprep.mubr.msk.bf16.mxu0 %vm535_vm1, %v530_v22 }
  0x35   : > { %2947 = vmatmul.mubr.msk.bf16.gmra.mxu0 %vm535_vm1, %v531_v27 }
  0x36   : > { %2950 = vmatprep.mubr.msk.bf16.mxu0 %vm535_vm1, %v532_v28 }
  0x3d   : > { %2951 = vmatmul.mubr.msk.bf16.gmra.mxu0 %vm535_vm1, %v533_v31 }
  0xdd   : > { %v2936_v39 = vpop.f32.mrf.mxu0 }
  0xde   : > { %v692_v41 = vmul.f32 %v2936_v39, %v3542_v38 }
  0xdf   : > { %v604_v42 = vpop.f32.mrf.mxu0 }
  0xe0   : > { %v3551_v43 = vadd.f32 %v3547_v40, %v692_v41  ;;  %v690_v44 = vmul.f32 %v3542_v38, %v604_v42 }
  0xe1   : > { %v2937_v45 = vpop.f32.mrf.mxu0 }
  0xe2   : > { %v739_v46 = vmin.f32 %v3551_v43, 20.0  ;;  %v3556_v47 = vadd.f32 %v3547_v40, %v690_v44  ;;  %v693_v48 = vmul.f32 %v2937_v45, %v3542_v38  ;;  %vm919_vm5 = vcmp.gt.f32.partialorder %v3551_v43, 20.0 }
  0xe3   : > { %v607_v49 = vpop.f32.mrf.mxu0 }
  0xe4   : > { %v737_v50 = vmin.f32 %v3556_v47, 20.0  ;;  %v3561_v51 = vadd.f32 %v3547_v40, %v693_v48  ;;  %v691_v52 = vmul.f32 %v3542_v38, %v607_v49  ;;  %v761_v54 = vmul.f32 1.442695, %v739_v46 }
  0xe5   : > { %v2940_v53 = vpop.f32.mrf.mxu0  ;;  %vm917_vm3 = vcmp.gt.f32.partialorder %v3556_v47, 20.0 }
  0xe6   : > { %v757_v55 = vmul.f32 1.442695, %v737_v50  ;;  %v740_v56 = vmin.f32 %v3561_v51, 20.0  ;;  %v3566_v57 = vadd.f32 %v3547_v40, %v691_v52  ;;  %v696_v58 = vmul.f32 %v2940_v53, %v3542_v38 }
  0xe7   : > { %v620_v59 = vpop.f32.mrf.mxu0  ;;  %vm920_vm6 = vcmp.gt.f32.partialorder %v3561_v51, 20.0 }
  0xe8   : > { %3166 = vpow2.f32 %v757_v55  ;;  %v763_v60 = vmul.f32 1.442695, %v740_v56  ;;  %v694_v61 = vmul.f32 %v3542_v38, %v620_v59  ;;  %v738_v62 = vmin.f32 %v3566_v57, 20.0 }
  0xe9   : > { %v3572_v63 = vadd.f32 %v3547_v40, %v696_v58  ;;  %v2941_v0 = vpop.f32.mrf.mxu0  ;;  %3168 = vpow2.f32 %v761_v54  ;;  %vm918_vm2 = vcmp.gt.f32.partialorder %v3566_v57, 20.0 }
  0xea   : > { %v3575_v1 = vadd.f32 %v3547_v40, %v694_v61  ;;  %v697_v2 = vmul.f32 %v2941_v0, %v3542_v38  ;;  %v759_v3 = vmul.f32 1.442695, %v738_v62  ;;  %3170 = vpow2.f32 %v763_v60 }
  0xeb   : > { %v743_v4 = vmin.f32 %v3572_v63, 20.0  ;;  %v623_v5 = vpop.f32.mrf.mxu0  ;;  %vm923_vm11 = vcmp.gt.f32.partialorder %v3572_v63, 20.0 }
  0xec   : > { %v741_v6 = vmin.f32 %v3575_v1, 20.0  ;;  %v3581_v7 = vadd.f32 %v3547_v40, %v697_v2  ;;  %v695_v8 = vmul.f32 %v3542_v38, %v623_v5  ;;  %3172 = vpow2.f32 %v759_v3 }
  0xed   : > { %v2944_v9 = vpop.f32.mrf.mxu0  ;;  %v769_v13 = vmul.f32 1.442695, %v743_v4  ;;  %vm921_vm9 = vcmp.gt.f32.partialorder %v3575_v1, 20.0 }
  0xee   : > { %v765_v10 = vmul.f32 1.442695, %v741_v6  ;;  %v744_v11 = vmin.f32 %v3581_v7, 20.0  ;;  %v3586_v12 = vadd.f32 %v3547_v40, %v695_v8  ;;  %v700_v14 = vmul.f32 %v2944_v9, %v3542_v38 }
  0xef   : > { %v636_v15 = vpop.f32.mrf.mxu0  ;;  %vm924_vm12 = vcmp.gt.f32.partialorder %v3581_v7, 20.0 }
  0xf0   : > { %3174 = vpow2.f32 %v765_v10  ;;  %v742_v16 = vmin.f32 %v3586_v12, 20.0  ;;  %v771_v17 = vmul.f32 1.442695, %v744_v11  ;;  %v698_v18 = vmul.f32 %v3542_v38, %v636_v15 }
  0xf1   : > { %v2945_v19 = vpop.f32.mrf.mxu0  ;;  %v3592_v21 = vadd.f32 %v3547_v40, %v700_v14  ;;  %3176 = vpow2.f32 %v769_v13  ;;  %vm922_vm10 = vcmp.gt.f32.partialorder %v3586_v12, 20.0 }
  0xf2   : > { %v767_v20 = vmul.f32 1.442695, %v742_v16  ;;  %v701_v22 = vmul.f32 %v2945_v19, %v3542_v38  ;;  %v3596_v23 = vadd.f32 %v3547_v40, %v698_v18  ;;  %v957_v18 = vlaneseq }
  0xf3   : > { %v639_v24 = vpop.f32.mrf.mxu0  ;;  %v747_v31 = vmin.f32 %v3592_v21, 20.0  ;;  %vm927_vm15 = vcmp.gt.f32.partialorder %v3592_v21, 20.0 }
  0xf4   : > { %3178 = vpow2.f32 %v767_v20  ;;  %v3599_v25 = vadd.f32 %v3547_v40, %v701_v22  ;;  %v699_v26 = vmul.f32 %v3542_v38, %v639_v24  ;;  %v745_v28 = vmin.f32 %v3596_v23, 20.0 }
  0xf5   : > { %v3167_v27 = vpop.eup %3166  ;;  %3180 = vpow2.f32 %v771_v17  ;;  %v2948_v29 = vpop.f32.mrf.mxu0  ;;  %v777_v50 = vmul.f32 1.442695, %v747_v31  ;;  %vm925_vm13 = vcmp.gt.f32.partialorder %v3596_v23, 20.0 }
  0xf6   : > { %v797_v30 = vadd.f32 2.0, %v3167_v27  ;;  %v3169_v32 = vpop.eup %3168  ;;  %v773_v33 = vmul.f32 1.442695, %v745_v28  ;;  %v748_v34 = vmin.f32 %v3599_v25, 20.0  ;;  %v3606_v35 = vadd.f32 %v3547_v40, %v699_v26 }
  0xf7   : > { %v704_v39 = vmul.f32 %v2948_v29, %v3542_v38  ;;  %v652_v41 = vpop.f32.mrf.mxu0  ;;  %v3171_v42 = vpop.eup %3170  ;;  %v799_v48 = vadd.f32 2.0, %v3169_v32 }
  0xf8   : > { %3182 = vpow2.f32 %v773_v33  ;;  %v746_v44 = vmin.f32 %v3606_v35, 20.0  ;;  %v3610_v49 = vmul.f32 %v3167_v27, %v797_v30  ;;  %v779_v53 = vmul.f32 1.442695, %v748_v34 }
  0xf9   : > { %v2949_v45 = vpop.f32.mrf.mxu0  ;;  %v3173_v46 = vpop.eup %3172  ;;  %v3613_v55 = vadd.f32 %v3547_v40, %v704_v39  ;;  %v800_v56 = vadd.f32 2.0, %v3171_v42  ;;  %v702_v58 = vmul.f32 %v3542_v38, %v652_v41  ;;  %v3619_v0 = vmul.f32 %v3169_v32, %v799_v48 }
  0xfa   : > { %v798_v52 = vadd.f32 2.0, %v3173_v46  ;;  %v775_v54 = vmul.f32 1.442695, %v746_v44  ;;  %v857_v3 = vadd.f32 2.0, %v3610_v49  ;;  %v705_v14 = vmul.f32 %v2949_v45, %v3542_v38 }
  0xfb   : > { %v655_v59 = vpop.f32.mrf.mxu0  ;;  %v751_v62 = vmin.f32 %v3613_v55, 20.0  ;;  %v3622_v2 = vadd.f32 %v3547_v40, %v702_v58  ;;  %v3626_v5 = vmul.f32 %v3171_v42, %v800_v56  ;;  %v859_v16 = vadd.f32 2.0, %v3619_v0 }
  0xfc   : > { %v3616_v61 = vmul.f32 %v3173_v46, %v798_v52  ;;  %3184 = vpow2.f32 %v775_v54  ;;  %v3637_v20 = vadd.f32 %v3547_v40, %v705_v14  ;;  %v703_v22 = vmul.f32 %v3542_v38, %v655_v59 }
  0xfd   : > { %v3175_v60 = vpop.eup %3174  ;;  %3186 = vpow2.f32 %v777_v50  ;;  %v749_v9 = vmin.f32 %v3622_v2, 20.0  ;;  %v2952_v10 = vpop.f32.mrf.mxu0  ;;  %v785_v13 = vmul.f32 1.442695, %v751_v62  ;;  %v860_v24 = vadd.f32 2.0, %v3626_v5 }
  0xfe   : > { %3188 = vpow2.f32 %v779_v53  ;;  %v3177_v4 = vpop.eup %3176  ;;  %v858_v6 = vadd.f32 2.0, %v3616_v61  ;;  %v801_v8 = vadd.f32 2.0, %v3175_v60  ;;  %v752_v31 = vmin.f32 %v3637_v20, 20.0 }
  0xff   : > { %3190 = vrcp.f32 %v857_v3  ;;  %v781_v19 = vmul.f32 1.442695, %v749_v9  ;;  %v803_v26 = vadd.f32 2.0, %v3177_v4  ;;  %v668_v28 = vpop.f32.mrf.mxu0  ;;  %v3648_v33 = vadd.f32 %v3547_v40, %v703_v22 }
 0x100   : > { %3192 = vrcp.f32 %v858_v6  ;;  %v3642_v27 = vmul.f32 %v3175_v60, %v801_v8  ;;  %v787_v34 = vmul.f32 1.442695, %v752_v31  ;;  %v961_v39 = vstv %s3634_s21 }
 0x101   : > { %v3179_v11 = vpop.eup %3178  ;;  %3194 = vpow2.f32 %v785_v13  ;;  %v3655_v41 = vmul.f32 %v3177_v4, %v803_v26  ;;  %v750_v42 = vmin.f32 %v3648_v33, 20.0  ;;  %v2953_v44 = vpop.f32.mrf.mxu0  ;;  %v3658_v45 = vshrl.u32 %v957_v18, 7 }
 0x102   : > { %v3181_v15 = vpop.eup %3180  ;;  %v802_v17 = vadd.f32 2.0, %v3179_v11  ;;  %3196 = vrcp.f32 %v859_v16  ;;  %v861_v46 = vadd.f32 2.0, %v3642_v27  ;;  %v708_v56 = vmul.f32 %v2952_v10, %v3542_v38 }
 0x103   : > { %v804_v29 = vadd.f32 2.0, %v3181_v15  ;;  %3198 = vpow2.f32 %v781_v19  ;;  %v783_v54 = vmul.f32 1.442695, %v750_v42  ;;  %v706_v58 = vmul.f32 %v3542_v38, %v668_v28 }
 0x104   : > { %v3644_v30 = vmul.f32 %v3179_v11, %v802_v17  ;;  %3200 = vrcp.f32 %v860_v24  ;;  %v964_v60 = vstv %s3652_s16  ;;  %v3669_v62 = vsel %vm566_vm0, %v3528_v36, 0  ;;  %v671_v11 = vpop.f32.mrf.mxu0 }
 0x105   : > { %v3183_v32 = vpop.eup %3182  ;;  %v3661_v48 = vmul.f32 %v3181_v15, %v804_v29  ;;  %3202 = vpow2.f32 %v787_v34  ;;  %v3672_v3 = vadd.s32 8, %v3658_v45  ;;  %v3676_v4 = vsel %vm566_vm0, %v3535_v37, 0 }
 0x106   : > { %v862_v50 = vadd.f32 2.0, %v3644_v30  ;;  %v805_v52 = vadd.f32 2.0, %v3183_v32  ;;  %v863_v8 = vadd.f32 2.0, %v3655_v41  ;;  %3204 = vpow2.f32 %v783_v54 }
 0x107   : > { %v3680_v10 = vadd.f32 %v3547_v40, %v708_v56  ;;  %3206 = vrcp.f32 %v861_v46  ;;  %v864_v36 = vadd.f32 2.0, %v3661_v48  ;;  %v3686_v14 = vadd.f32 %v3547_v40, %v706_v58 }
 0x108   : > { %v3683_v13 = vmul.f32 %v3183_v32, %v805_v52  ;;  %3208 = vrcp.f32 %v862_v50  ;;  %v709_v16 = vmul.f32 %v2953_v44, %v3542_v38  ;;  %v839_v17 = vmul.f32 %v3619_v0, %v3551_v43 }
 0x109   : > { %v3185_v53 = vpop.eup %3184  ;;  %v755_v15 = vmin.f32 %v3680_v10, 20.0  ;;  %v753_v19 = vmin.f32 %v3686_v14, 20.0  ;;  %v707_v22 = vmul.f32 %v3542_v38, %v671_v11  ;;  %vm3696_vm4 = vcmp.eq.s32.totalorder %v961_v39, 1 }
 0x10a   : > { %v3187_v59 = vpop.eup %3186  ;;  %v806_v9 = vadd.f32 2.0, %v3185_v53  ;;  %v837_v28 = vmul.f32 %v3610_v49, %v3556_v47  ;;  %v3705_v32 = vadd.f32 %v3547_v40, %v709_v16  ;;  %3210 = vrcp.f32 %v863_v8 }
 0x10b   : > { %v3189_v6 = vpop.eup %3188  ;;  %v807_v37 = vadd.f32 2.0, %v3187_v59  ;;  %v793_v31 = vmul.f32 1.442695, %v755_v15  ;;  %v865_v34 = vadd.f32 2.0, %v3683_v13  ;;  %v789_v42 = vmul.f32 1.442695, %v753_v19 }
 0x10c   : > { %v808_v18 = vadd.f32 2.0, %v3189_v6  ;;  %v3191_v26 = vpop.eup %3190  ;;  %v3702_v29 = vmul.f32 %v3185_v53, %v806_v9  ;;  %v3709_v38 = vadd.f32 %v3547_v40, %v707_v22  ;;  %v838_v44 = vmul.f32 %v3616_v61, %v3566_v57 }
 0x10d   : > { %v3193_v0 = vpop.eup %3192  ;;  %3212 = vrcp.f32 %v864_v36  ;;  %v3713_v49 = vmul.f32 %v3187_v59, %v807_v37  ;;  %v756_v46 = vmin.f32 %v3705_v32, 20.0  ;;  %v897_v54 = vmul.f32 %v3191_v26, %v837_v28 }
 0x10e   : > { %v3195_v39 = vpop.eup %3194  ;;  %v3717_v52 = vmul.f32 %v3189_v6, %v808_v18  ;;  %3214 = vpow2.f32 %v793_v31  ;;  %v754_v53 = vmin.f32 %v3709_v38, 20.0  ;;  %v866_v56 = vadd.f32 2.0, %v3702_v29 }
 0x10f   : > { %v3197_v50 = vpop.eup %3196  ;;  %3216 = vpow2.f32 %v789_v42  ;;  %v795_v61 = vmul.f32 1.442695, %v756_v46  ;;  %v898_v58 = vmul.f32 %v3193_v0, %v838_v44  ;;  %v811_v8 = vadd.f32 2.0, %v3195_v39 }
 0x110   : > { %v3199_v40 = vpop.eup %3198  ;;  %3218 = vrcp.f32 %v865_v34  ;;  %v791_v11 = vmul.f32 1.442695, %v754_v53  ;;  %v840_v6 = vmul.f32 %v3626_v5, %v3561_v51  ;;  %v867_v36 = vadd.f32 2.0, %v3713_v49 }
 0x111   : > { %v3201_v59 = vpop.eup %3200  ;;  %v809_v9 = vadd.f32 2.0, %v3199_v40  ;;  %3220 = vpow2.f32 %v795_v61  ;;  %v938_v37 = vsel %vm918_vm2, %v3566_v57, %v898_v58  ;;  %v868_v16 = vadd.f32 2.0, %v3717_v52 }
 0x112   : > { %v3203_v15 = vpop.eup %3202  ;;  %3222 = vpow2.f32 %v791_v11  ;;  %v937_v19 = vsel %vm917_vm3, %v3556_v47, %v897_v54  ;;  %vm1135_vm8 = vcmp.lt.s32.totalorder %v3672_v3, 15  ;;  %v899_v5 = vmul.f32 %v3197_v50, %v839_v17 }
 0x113   : > { %v3729_v18 = vmul.f32 %v3199_v40, %v809_v9  ;;  %3224 = vrcp.f32 %v866_v56  ;;  %v812_v22 = vadd.f32 2.0, %v3203_v15  ;;  %v3738_v57 = vsel %vm3696_vm4, %v938_v37, 0.0  ;;  %v3205_v26 = vpop.eup %3204 }
 0x114   : > { %v900_v28 = vmul.f32 %v3201_v59, %v840_v6  ;;  %v3741_v31 = vmul.f32 %v3195_v39, %v811_v8  ;;  %v3207_v0 = vpop.eup %3206  ;;  %v843_v17 = vmul.f32 %v3655_v41, %v3572_v63  ;;  %3226 = vrcp.f32 %v867_v36 }
 0x115   : > { %v869_v47 = vadd.f32 2.0, %v3729_v18  ;;  %v810_v34 = vadd.f32 2.0, %v3205_v26  ;;  %v3748_v42 = vsel %vm3696_vm4, %v937_v19, 0.0  ;;  %v3209_v44 = vpop.eup %3208  ;;  %v841_v46 = vmul.f32 %v3642_v27, %v3575_v1 }
 0x116   : > { %3228 = vrcp.f32 %v868_v16  ;;  %v3752_v50 = vmul.f32 %v3203_v15, %v812_v22  ;;  %v1166_v39 = vpack.c.bf16 %v3738_v57, %v3748_v42  ;;  %v842_v53 = vmul.f32 %v3644_v30, %v3586_v12  ;;  %v3797_v15 = vld [vmem:[%s4735_s6 + $0x6] sm:$0x3] }
 0x117   : > { %v3758_v41 = vmul.f32 %v3205_v26, %v810_v34  ;;  %v1053_v54 = vrot.slane %v3738_v57, 1  ;;  %v3764_v24 = vsel %vm919_vm5, %v3551_v43, %v899_v5  ;;  %v901_v40 = vmul.f32 %v3207_v0, %v841_v46  ;;  %v3211_v30 = vpop.eup %3210 }
 0x118   : > { %v871_v27 = vadd.f32 2.0, %v3741_v31  ;;  %3230 = vrcp.f32 %v869_v47  ;;  %2956 = vmatprep.mubr.msk.bf16.mxu1 %vm535_vm1, %v1166_v39  ;;  %v3771_v56 = vsel %vm920_vm6, %v3561_v51, %v900_v28  ;;  %v844_v61 = vmul.f32 %v3661_v48, %v3581_v7 }
 0x119   : > { %v902_v58 = vmul.f32 %v3209_v44, %v842_v53  ;;  %v870_v59 = vadd.f32 2.0, %v3758_v41  ;;  %v1052_v43 = vrot.slane %v3748_v42, 1  ;;  %v3780_v9 = vmul.f32 %v3713_v49, %v3592_v21 }
 0x11a   : > { %v3213_v8 = vpop.eup %3212  ;;  %v872_v11 = vadd.f32 2.0, %v3752_v50  ;;  %v1055_v51 = vrot.slane %v3764_v24, 1  ;;  %v3786_v6 = vpack.c.bf16 %v3771_v56, %v3764_v24  ;;  %v845_v36 = vmul.f32 %v3683_v13, %v3596_v23 }
 0x11b   : > { %v3215_v48 = vpop.eup %3214  ;;  %v846_v37 = vmul.f32 %v3702_v29, %v3606_v35  ;;  %3232 = vrcp.f32 %v870_v59  ;;  %v1054_v49 = vsel %vm1051_vm7, %v1052_v43, %v1053_v54  ;;  %v3805_v13 = vsel %vm921_vm9, %v3575_v1, %v901_v40 }
 0x11c   : > { %v3217_v16 = vpop.eup %3216  ;;  %3234 = vrcp.f32 %v871_v27  ;;  %v815_v19 = vadd.f32 2.0, %v3215_v48  ;;  %2957 = vmatmul.mubr.msk.bf16.vlgmr.msra.gmra.mxu1 %vm535_vm1, %v3786_v6  ;;  %v1056_v5 = vsel %vm1051_vm7, %v1053_v54, %v1055_v51  ;;  %v1057_v26 = vrot.slane %v3771_v56, 1 }
 0x11d   : > { %v3219_v29 = vpop.eup %3218  ;;  %v813_v22 = vadd.f32 2.0, %v3217_v16  ;;  %2973 = vmatpush3.bf16.msra.mxu1 %v3669_v62  ;;  %v1137_v28 = vsel %vm1135_vm8, %v1056_v5, 0.0  ;;  %v3814_v47 = vsel %vm922_vm10, %v3586_v12, %v902_v58  ;;  %vm926_vm14 = vcmp.gt.f32.partialorder %v3606_v35, 20.0 }
 0x11e   : > { %v3221_v0 = vpop.eup %3220  ;;  %3236 = vrcp.f32 %v872_v11  ;;  %v3818_v1 = vmul.f32 %v3215_v48, %v815_v19  ;;  %v1176_v34 = vpack.c.bf16 %v1137_v28, %v1054_v49  ;;  %v1059_v44 = vrot.slane %v3805_v13, 1  ;;  %3120 = vmatprep.subr.msk.bf16.mxu1 %vm566_vm0, %v3797_v15 }
 0x11f   : > { %v3223_v62 = vpop.eup %3222  ;;  %v903_v46 = vmul.f32 %v3211_v30, %v843_v17  ;;  %v3823_v39 = vmul.f32 %v3217_v16, %v813_v22  ;;  %v816_v12 = vadd.f32 2.0, %v3221_v0  ;;  %v3827_v53 = vpack.c.bf16 %v3814_v47, %v3805_v13 }
 0x120   : > { %v3225_v54 = vpop.eup %3224  ;;  %v904_v40 = vmul.f32 %v3213_v8, %v844_v61  ;;  %v875_v27 = vadd.f32 2.0, %v3818_v1  ;;  %v814_v58 = vadd.f32 2.0, %v3223_v62  ;;  %2992 = vmatprep.mubr.msk.bf16.mxu0 %vm535_vm1, %v1176_v34  ;;  %v1060_v59 = vsel %vm1051_vm7, %v1057_v26, %v1059_v44 }
 0x121   : > { %vm928_vm2 = vcmp.gt.f32.partialorder %v3599_v25, 20.0  ;;  %v873_v17 = vadd.f32 2.0, %v3823_v39  ;;  %v3835_v30 = vmul.f32 %v3221_v0, %v816_v12  ;;  %v1058_v43 = vsel %vm1051_vm7, %v1055_v51, %v1057_v26  ;;  %2960 = vmatprep.mubr.msk.bf16.mxu1 %vm535_vm1, %v3827_v53  ;;  %v3227_v8 = vpop.eup %3226 }
 0x122   : > { %v1139_v61 = vsel %vm1135_vm8, %v1060_v59, 0.0  ;;  %v905_v11 = vmul.f32 %v3219_v29, %v845_v36  ;;  %v3842_v48 = vmul.f32 %v3223_v62, %v814_v58  ;;  %v1061_v49 = vrot.slane %v3814_v47, 1  ;;  %v3856_v36 = vld [vmem:[%s4735_s6 + $0xc] sm:$0x3] }
 0x123   : > { %v3845_v16 = vpack.c.bf16 %v1139_v61, %v1058_v43  ;;  %v3229_v19 = vpop.eup %3228  ;;  %v906_v5 = vmul.f32 %v3225_v54, %v846_v37  ;;  %3238 = vrcp.f32 %v873_v17  ;;  %v876_v22 = vadd.f32 2.0, %v3835_v30 }
 0x124   : > { %v3851_v51 = vsel %vm923_vm11, %v3572_v63, %v903_v46  ;;  %v848_v29 = vmul.f32 %v3717_v52, %v3599_v25  ;;  %vm929_vm3 = vcmp.gt.f32.partialorder %v3622_v2, 20.0  ;;  %3240 = vrcp.f32 %v875_v27 }
 0x125   : > { %v874_v37 = vadd.f32 2.0, %v3842_v48  ;;  %2993 = vmatmul.mubr.msk.bf16.vlgmr.msra.gmra.mxu0 %vm535_vm1, %v3845_v16  ;;  %v3867_v63 = vsel %vm924_vm12, %v3581_v7, %v904_v40  ;;  %v3231_v26 = vpop.eup %3230  ;;  %v907_v28 = vmul.f32 %v3227_v8, %v3780_v9  ;;  %v849_v0 = vmul.f32 %v3729_v18, %v3622_v2 }
 0x126   : > { %3242 = vrcp.f32 %v876_v22  ;;  %v1063_v52 = vrot.slane %v3851_v51, 1  ;;  %3027 = vmatpush3.bf16.msra.mxu0 %v3676_v4  ;;  %v908_v34 = vmul.f32 %v3229_v19, %v848_v29  ;;  %v850_v62 = vmul.f32 %v3758_v41, %v3648_v33 }
 0x127   : > { %v3878_v46 = vpack.c.bf16 %v3867_v63, %v3851_v51  ;;  %v1062_v7 = vsel %vm1051_vm7, %v1059_v44, %v1061_v49  ;;  %3123 = vmatprep.subr.msk.bf16.mxu0 %vm566_vm0, %v3856_v36  ;;  %vm931_vm4 = vcmp.gt.f32.partialorder %v3613_v55, 20.0  ;;  %v1065_v18 = vrot.slane %v3867_v63, 1 }
 0x128   : > { %v1064_v9 = vsel %vm1051_vm7, %v1061_v49, %v1063_v52  ;;  %v3889_v4 = vsel %vm925_vm13, %v3596_v23, %v905_v11  ;;  %v3894_v41 = vsel %vm926_vm14, %v3606_v35, %v906_v5  ;;  %v3233_v44 = vpop.eup %3232  ;;  %v909_v12 = vmul.f32 %v3231_v26, %v849_v0 }
 0x129   : > { %3244 = vrcp.f32 %v874_v37  ;;  %vm990_vm5 = vcmask 1040384   ;;  %2961 = vmatmul.mubr.msk.bf16.gmra.mxu1 %vm535_vm1, %v3878_v46  ;;  %v1141_v54 = vsel %vm1135_vm8, %v1064_v9, 0.0  ;;  %v1067_v40 = vrot.slane %v3889_v4, 1  ;;  %v3235_v27 = vpop.eup %3234 }
 0x12a   : > { %vm932_vm6 = vcmp.gt.f32.partialorder %v3637_v20, 20.0  ;;  %v910_v23 = vmul.f32 %v3233_v44, %v850_v62  ;;  %v3902_v58 = vpack.c.bf16 %v1141_v54, %v1062_v7  ;;  %v1069_v35 = vrot.slane %v3894_v41, 1 }
 0x12b   : > { %v3907_v59 = vpack.c.bf16 %v3894_v41, %v3889_v4  ;;  %v851_v17 = vmul.f32 %v3741_v31, %v3613_v55  ;;  %v1068_v43 = vsel %vm1051_vm7, %v1065_v18, %v1067_v40  ;;  %v3915_v61 = vsel %vm927_vm15, %v3592_v21, %v907_v28  ;;  %v3237_v11 = vpop.eup %3236 }
 0x12c   : > { %v3920_v8 = vsel %vm928_vm2, %v3599_v25, %v908_v34  ;;  %vm930_vm9 = vcmp.gt.f32.partialorder %v3648_v33, 20.0  ;;  %vm1112_vm10 = vcmp.gt.s32.totalorder %v3658_v45, 0  ;;  %2996 = vmatprep.mubr.msk.bf16.mxu0 %vm535_vm1, %v3902_v58  ;;  %v1066_v31 = vsel %vm1051_vm7, %v1063_v52, %v1065_v18 }
 0x12d   : > { %2964 = vmatprep.mubr.msk.bf16.mxu1 %vm535_vm1, %v3907_v59  ;;  %v1143_v21 = vsel %vm1135_vm8, %v1068_v43, 0.0  ;;  %v1071_v49 = vrot.slane %v3915_v61, 1  ;;  %v911_v25 = vmul.f32 %v3235_v27, %v851_v17  ;;  %v852_v19 = vmul.f32 %v3752_v50, %v3637_v20 }
 0x12e   : > { %v3934_v5 = vpack.c.bf16 %v1143_v21, %v1066_v31  ;;  %v1070_v22 = vsel %vm1051_vm7, %v1067_v40, %v1069_v35  ;;  %v1073_v29 = vrot.slane %v3920_v8, 1  ;;  %v3942_v26 = vsel %vm929_vm3, %v3622_v2, %v909_v12 }
 0x12f   : > { %v1072_v37 = vsel %vm1051_vm7, %v1069_v35, %v1071_v49  ;;  %v3945_v28 = vsel %vm930_vm9, %v3648_v33, %v910_v23  ;;  %v912_v0 = vmul.f32 %v3237_v11, %v852_v19  ;;  %v3951_v50 = vpack.c.bf16 %v3920_v8, %v3915_v61 }
 0x130   : > { %2997 = vmatmul.mubr.msk.bf16.gmra.mxu0 %vm535_vm1, %v3934_v5  ;;  %v1145_v52 = vsel %vm1135_vm8, %v1072_v37, 0.0  ;;  %v1075_v34 = vrot.slane %v3942_v26, 1  ;;  %vm935_vm11 = vcmp.gt.f32.partialorder %v3680_v10, 20.0  ;;  %v853_v2 = vmul.f32 %v3823_v39, %v3686_v14  ;;  %v3239_v18 = vpop.eup %3238 }
 0x131   : > { %v991_v33 = vrot.slane %v3748_v42, 7  ;;  %v3960_v62 = vpack.c.bf16 %v1145_v52, %v1070_v22  ;;  %v3964_v7 = vpack.c.bf16 %v3945_v28, %v3942_v26  ;;  %vm933_vm12 = vcmp.gt.f32.partialorder %v3686_v14, 20.0  ;;  %2965 = vmatmul.mubr.msk.bf16.gmra.mxu1 %vm535_vm1, %v3951_v50  ;;  %v3241_v39 = vpop.eup %3240 }
 0x132   : > { %v992_v9 = vrot.slane %v3738_v57, 7  ;;  %v1076_v44 = vsel %vm1051_vm7, %v1073_v29, %v1075_v34  ;;  %v3974_v42 = vsel %vm931_vm4, %v3613_v55, %v911_v25  ;;  %vm3978_vm13 = vcmp.eq.s32.totalorder %v964_v60, 1 }
 0x133   : > { %v913_v54 = vmul.f32 %v3239_v18, %v853_v2  ;;  %3000 = vmatprep.mubr.msk.bf16.mxu0 %vm535_vm1, %v3960_v62  ;;  %v1077_v57 = vrot.slane %v3945_v28, 1  ;;  %2968 = vmatprep.mubr.msk.bf16.mxu1 %vm535_vm1, %v3964_v7  ;;  %v1074_v40 = vsel %vm1051_vm7, %v1071_v49, %v1073_v29  ;;  %v1147_v55 = vsel %vm1135_vm8, %v1076_v44, 0.0  ;;  %v3243_v27 = vpop.eup %3242 }
 0x134   : > { %v855_v60 = vmul.f32 %v3818_v1, %v3680_v10  ;;  %vm936_vm14 = vcmp.gt.f32.partialorder %v3705_v32, 20.0  ;;  %v3993_v23 = vpack.c.bf16 %v1147_v55, %v1074_v40  ;;  %v3998_v35 = vsel %vm932_vm6, %v3637_v20, %v912_v0 }
 0x135   : > { %v4003_v17 = vsel %vm933_vm12, %v3686_v14, %v913_v54  ;;  %v856_v43 = vmul.f32 %v3835_v30, %v3705_v32  ;;  %v1050_v11 = vsel %vm990_vm5, 0.0, %v991_v33  ;;  %v1079_v1 = vrot.slane %v3974_v42, 1 }
 0x136   : > { %v915_v31 = vmul.f32 %v3241_v39, %v855_v60  ;;  %v1083_v21 = vrot.slane %v4003_v17, 1  ;;  %v994_v49 = vrot.slane %v3764_v24, 7  ;;  %v993_v20 = vsel %vm990_vm5, %v991_v33, %v992_v9  ;;  %v3245_v25 = vpop.eup %3244 }
 0x137   : > { %v916_v19 = vmul.f32 %v3243_v27, %v856_v43  ;;  %v1081_v22 = vrot.slane %v3998_v35, 1  ;;  %v1078_v14 = vsel %vm1051_vm7, %v1075_v34, %v1077_v57  ;;  %v1080_v29 = vsel %vm1051_vm7, %v1077_v57, %v1079_v1 }
 0x138   : > { %v998_v30 = vrot.slane %v3805_v13, 7  ;;  %3001 = vmatmul.mubr.msk.bf16.gmra.mxu0 %vm535_vm1, %v3993_v23  ;;  %v4020_v37 = vpack.c.bf16 %v3998_v35, %v3974_v42  ;;  %v1114_v24 = vsel %vm1112_vm10, %v1050_v11, 0.0  ;;  %v1149_v0 = vsel %vm1135_vm8, %v1080_v29, 0.0 }
 0x139   : > { %v854_v52 = vmul.f32 %v3842_v48, %v3709_v38  ;;  %v1156_v34 = vpack.c.bf16 %v993_v20, %v1114_v24  ;;  %v4028_v2 = vpack.c.bf16 %v1149_v0, %v1078_v14  ;;  %v1084_v13 = vsel %vm1051_vm7, %v1081_v22, %v1083_v21 }
 0x13a   : > { %v955_v33 = vsel %vm935_vm11, %v3680_v10, %v915_v31  ;;  %v995_v18 = vsel %vm990_vm5, %v992_v9, %v994_v49  ;;  %v1000_v44 = vrot.slane %v3814_v47, 7  ;;  %2969 = vmatmul.mubr.msk.bf16.gmra.mxu1 %vm535_vm1, %v4020_v37  ;;  %v1151_v48 = vsel %vm1135_vm8, %v1084_v13, 0.0 }
 0x13b   : > { %v956_v39 = vsel %vm936_vm14, %v3705_v32, %v916_v19  ;;  %v914_v54 = vmul.f32 %v3245_v25, %v854_v52  ;;  %v996_v57 = vrot.slane %v3771_v56, 7  ;;  %2974 = vmatprep.mubr.msk.bf16.mxu1 %vm535_vm1, %v1156_v34  ;;  %3004 = vmatprep.mubr.msk.bf16.mxu0 %vm535_vm1, %v4028_v2  ;;  %v1082_v10 = vsel %vm1051_vm7, %v1079_v1, %v1081_v22 }
 0x13c   : > { %v4050_v47 = vpack.c.bf16 %v1151_v48, %v1082_v10  ;;  %v1116_v9 = vsel %vm1112_vm10, %v995_v18, 0.0  ;;  %v1002_v40 = vrot.slane %v3851_v51, 7  ;;  %v1585_v32 = vsel %vm566_vm0, %v3797_v15, 0  ;;  %v2819_v10 = vld [vmem:[%s4735_s6 + $0x10] sm:$0x3] }
 0x13d   : > { %v999_v55 = vsel %vm990_vm5, %v996_v57, %v998_v30  ;;  %v4060_v56 = vsel %vm3978_vm13, %v955_v33, 0.0  ;;  %v4064_v27 = vsel %vm3978_vm13, %v956_v39, 0.0  ;;  %vm934_vm15 = vcmp.gt.f32.partialorder %v3709_v38, 20.0 }
 0x13e   : > { %v1001_v60 = vsel %vm990_vm5, %v998_v30, %v1000_v44  ;;  %v997_v43 = vsel %vm990_vm5, %v994_v49, %v996_v57  ;;  %v1006_v51 = vrot.slane %v3889_v4, 7  ;;  %v1003_v15 = vsel %vm990_vm5, %v1000_v44, %v1002_v40 }
 0x13f   : > { %v4072_v11 = vsel %vm934_vm15, %v3709_v38, %v914_v54  ;;  %v4076_v1 = vpack.c.bf16 %v997_v43, %v1116_v9  ;;  %v1118_v12 = vsel %vm1112_vm10, %v999_v55, 0.0  ;;  %v1004_v49 = vrot.slane %v3867_v63, 7  ;;  %v4090_v38 = vld [vmem:[%s4735_s6 + $0xa] sm:$0x3] }
 0x140   : > { %3005 = vmatmul.mubr.msk.bf16.gmra.mxu0 %vm535_vm1, %v4050_v47  ;;  %v1024_v31 = vrot.slane %v4072_v11, 7  ;;  %v1085_v20 = vrot.slane %v4072_v11, 1  ;;  %v4085_v4 = vpack.c.bf16 %v1001_v60, %v1118_v12  ;;  %v1026_v25 = vrot.slane %v4060_v56, 7 }
 0x141   : > { %3028 = vmatprep.mubr.msk.bf16.mxu0 %vm535_vm1, %v3786_v6  ;;  %v1028_v19 = vrot.slane %v4064_v27, 7  ;;  %v1087_v22 = vrot.slane %v4060_v56, 1  ;;  %v1008_v14 = vrot.slane %v3894_v41, 7  ;;  %v1120_v6 = vsel %vm1112_vm10, %v1003_v15, 0.0 }
 0x142   : > { %2975 = vmatmul.mubr.msk.bf16.vlgmr.msra.gmra.mxu1 %vm535_vm1, %v4076_v1  ;;  %v1007_v63 = vsel %vm990_vm5, %v1004_v49, %v1006_v51  ;;  %v1027_v29 = vsel %vm990_vm5, %v1024_v31, %v1026_v25  ;;  %v1089_v41 = vrot.slane %v4064_v27, 1  ;;  %v1086_v0 = vsel %vm1051_vm7, %v1083_v21, %v1085_v20 }
 0x143   : > { %3009 = vmatpush3.bf16.msra.mxu1 %v1585_v32  ;;  %2978 = vmatprep.mubr.msk.bf16.mxu1 %vm535_vm1, %v4085_v4  ;;  %v4107_v30 = vsel %vm990_vm5, %v1026_v25, %v1028_v19  ;;  %v4114_v24 = vsel %vm1112_vm10, %v1027_v29, 0.0  ;;  %v1088_v52 = vsel %vm1051_vm7, %v1085_v20, %v1087_v22  ;;  %v1175_v34 = vpack.c.bf16 %v4064_v27, %v4060_v56 }
 0x144   : > { %3122 = vmatprep.subr.msk.bf16.mxu1 %vm566_vm0, %v4090_v38  ;;  %v1165_v13 = vpack.c.bf16 %v4107_v30, %v4114_v24  ;;  %v1153_v33 = vsel %vm1135_vm8, %v1088_v52, 0.0  ;;  %v4127_v18 = vsel %vm1051_vm7, %v1087_v22, %v1089_v41  ;;  %v1111_v44 = vsel %vm1051_vm7, %v1089_v41, 0.0 }
 0x145   : > { %v1009_v48 = vsel %vm990_vm5, %v1006_v51, %v1008_v14  ;;  %v1948_v21 = vsel %vm566_vm0, %v3856_v36, 0  ;;  %v4133_v39 = vpack.c.bf16 %v1153_v33, %v1086_v0  ;;  %v4137_v54 = vsel %vm1135_vm8, %v1111_v44, 0.0 }
 0x146   : > { %v1005_v57 = vsel %vm990_vm5, %v1002_v40, %v1004_v49  ;;  %v1185_v9 = vpack.c.bf16 %v4137_v54, %v4127_v18  ;;  %v1010_v32 = vrot.slane %v3915_v61, 7  ;;  %v1122_v3 = vsel %vm1112_vm10, %v1007_v63, 0.0  ;;  %v2810_v63 = vld [vmem:[%s4735_s6 + $0xe] sm:$0x3] }
 0x147   : > { %v1159_v36 = vpack.c.bf16 %v1005_v57, %v1120_v6  ;;  %v1014_v55 = vrot.slane %v3942_v26, 7  ;;  %v1160_v40 = vpack.c.bf16 %v1009_v48, %v1122_v3  ;;  %v1016_v60 = vrot.slane %v3945_v28, 7 }
 0x148   : > { %3029 = vmatmul.mubr.msk.bf16.vlgmr.msra.gmra.mxu0 %vm535_vm1, %v3827_v53  ;;  %v1011_v61 = vsel %vm990_vm5, %v1008_v14, %v1010_v32  ;;  %v1012_v43 = vrot.slane %v3920_v8, 7  ;;  %v1018_v28 = vrot.slane %v3974_v42, 7  ;;  %v1020_v19 = vrot.slane %v3998_v35, 7 }
 0x149   : > { %3032 = vmatprep.mubr.msk.bf16.mxu0 %vm535_vm1, %v3878_v46  ;;  %3063 = vmatpush3.bf16.msra.mxu0 %v1948_v21  ;;  %v1124_v26 = vsel %vm1112_vm10, %v1011_v61, 0.0  ;;  %v1017_v15 = vsel %vm990_vm5, %v1014_v55, %v1016_v60  ;;  %v1174_v35 = vpack.c.bf16 %v4072_v11, %v4003_v17  ;;  %v1827_v6 = vsel %vm566_vm0, %v4090_v38, 0 }
 0x14a   : > { %2979 = vmatmul.mubr.msk.bf16.gmra.mxu1 %vm535_vm1, %v1159_v36  ;;  %3125 = vmatprep.subr.msk.bf16.mxu0 %vm566_vm0, %v2819_v10  ;;  %v1015_v51 = vsel %vm990_vm5, %v1012_v43, %v1014_v55  ;;  %v1013_v12 = vsel %vm990_vm5, %v1010_v32, %v1012_v43  ;;  %v1019_v25 = vsel %vm990_vm5, %v1016_v60, %v1018_v28  ;;  %v1022_v38 = vrot.slane %v4003_v17, 7 }
 0x14b   : > { %2982 = vmatprep.mubr.msk.bf16.mxu1 %vm535_vm1, %v1160_v40  ;;  %v1161_v20 = vpack.c.bf16 %v1013_v12, %v1124_v26  ;;  %v1126_v8 = vsel %vm1112_vm10, %v1015_v51, 0.0  ;;  %v1128_v42 = vsel %vm1112_vm10, %v1019_v25, 0.0  ;;  %v1021_v22 = vsel %vm990_vm5, %v1018_v28, %v1020_v19 }
 0x14c   : > { %v1162_v49 = vpack.c.bf16 %v1017_v15, %v1126_v8  ;;  %v1163_v14 = vpack.c.bf16 %v1021_v22, %v1128_v42  ;;  %v1025_v29 = vsel %vm990_vm5, %v1022_v38, %v1024_v31  ;;  %v2069_v17 = vsel %vm566_vm0, %v2810_v63, 0 }
 0x150   : > { %3033 = vmatmul.mubr.msk.bf16.gmra.mxu0 %vm535_vm1, %v3907_v59 }
 0x151   : > { %3036 = vmatprep.mubr.msk.bf16.mxu0 %vm535_vm1, %v3951_v50 }
 0x152   : > { %2983 = vmatmul.mubr.msk.bf16.gmra.mxu1 %vm535_vm1, %v1161_v20 }
 0x153   : > { %2986 = vmatprep.mubr.msk.bf16.mxu1 %vm535_vm1, %v1162_v49 }
 0x158   : > { %3037 = vmatmul.mubr.msk.bf16.gmra.mxu0 %vm535_vm1, %v3964_v7 }
 0x159   : > { %3040 = vmatprep.mubr.msk.bf16.mxu0 %vm535_vm1, %v4020_v37 }
 0x15a   : > { %2987 = vmatmul.mubr.msk.bf16.gmra.mxu1 %vm535_vm1, %v1163_v14 }
 0x15b   : > { %3010 = vmatprep.mubr.msk.bf16.mxu1 %vm535_vm1, %v4076_v1  ;;  %v2190_v1 = vsel %vm566_vm0, %v2819_v10, 0 }
 0x160   : > { %3041 = vmatmul.mubr.msk.bf16.gmra.mxu0 %vm535_vm1, %v1174_v35 }
 0x161   : > { %3064 = vmatprep.mubr.msk.bf16.mxu0 %vm535_vm1, %v4085_v4 }
 0x162   : > { %3011 = vmatmul.mubr.msk.bf16.vlgmr.msra.gmra.mxu1 %vm535_vm1, %v4085_v4  ;;  %v1023_v4 = vsel %vm990_vm5, %v1020_v19, %v1022_v38 }
 0x163   : > { %3045 = vmatpush3.bf16.msra.mxu1 %v1827_v6  ;;  %3014 = vmatprep.mubr.msk.bf16.mxu1 %vm535_vm1, %v1159_v36  ;;  %v1130_v41 = vsel %vm1112_vm10, %v1023_v4, 0.0 }
 0x164   : > { %3124 = vmatprep.subr.msk.bf16.mxu1 %vm566_vm0, %v2810_v63  ;;  %v1164_v0 = vpack.c.bf16 %v1025_v29, %v1130_v41 }
 0x168   : > { %3065 = vmatmul.mubr.msk.bf16.vlgmr.msra.gmra.mxu0 %vm535_vm1, %v1159_v36 }
 0x169   : > { %3068 = vmatprep.mubr.msk.bf16.mxu0 %vm535_vm1, %v1160_v40  ;;  %3099 = vmatpush3.bf16.msra.mxu0 %v2190_v1 }
 0x16a   : > { %3015 = vmatmul.mubr.msk.bf16.gmra.mxu1 %vm535_vm1, %v1160_v40 }
 0x16b   : > { %3018 = vmatprep.mubr.msk.bf16.mxu1 %vm535_vm1, %v1161_v20 }
 0x170   : > { %3069 = vmatmul.mubr.msk.bf16.gmra.mxu0 %vm535_vm1, %v1161_v20 }
 0x171   : > { %3072 = vmatprep.mubr.msk.bf16.mxu0 %vm535_vm1, %v1162_v49 }
 0x172   : > { %3019 = vmatmul.mubr.msk.bf16.gmra.mxu1 %vm535_vm1, %v1162_v49 }
 0x173   : > { %3022 = vmatprep.mubr.msk.bf16.mxu1 %vm535_vm1, %v1163_v14 }
 0x178   : > { %3073 = vmatmul.mubr.msk.bf16.gmra.mxu0 %vm535_vm1, %v1163_v14 }
 0x179   : > { %3076 = vmatprep.mubr.msk.bf16.mxu0 %vm535_vm1, %v1164_v0 }
 0x17a   : > { %3023 = vmatmul.mubr.msk.bf16.gmra.mxu1 %vm535_vm1, %v1164_v0 }
 0x17b   : > { %3046 = vmatprep.mubr.msk.bf16.mxu1 %vm535_vm1, %v3845_v16 }
 0x180   : > { %3077 = vmatmul.mubr.msk.bf16.gmra.mxu0 %vm535_vm1, %v1165_v13 }
 0x181   : > { %3100 = vmatprep.mubr.msk.bf16.mxu0 %vm535_vm1, %v3902_v58 }
 0x182   : > { %3047 = vmatmul.mubr.msk.bf16.vlgmr.msra.gmra.mxu1 %vm535_vm1, %v3902_v58 }
 0x183   : > { %3081 = vmatpush3.bf16.msra.mxu1 %v2069_v17  ;;  %3050 = vmatprep.mubr.msk.bf16.mxu1 %vm535_vm1, %v3934_v5 }
 0x188   : > { %3101 = vmatmul.mubr.msk.bf16.vlgmr.msra.gmra.mxu0 %vm535_vm1, %v3934_v5 }
 0x189   : > { %3104 = vmatprep.mubr.msk.bf16.mxu0 %vm535_vm1, %v3960_v62 }
 0x18a   : > { %3051 = vmatmul.mubr.msk.bf16.gmra.mxu1 %vm535_vm1, %v3960_v62 }
 0x18b   : > { %3054 = vmatprep.mubr.msk.bf16.mxu1 %vm535_vm1, %v3993_v23 }
 0x190   : > { %3105 = vmatmul.mubr.msk.bf16.gmra.mxu0 %vm535_vm1, %v3993_v23 }
 0x191   : > { %3108 = vmatprep.mubr.msk.bf16.mxu0 %vm535_vm1, %v4028_v2 }
 0x192   : > { %3055 = vmatmul.mubr.msk.bf16.gmra.mxu1 %vm535_vm1, %v4028_v2 }
 0x193   : > { %3058 = vmatprep.mubr.msk.bf16.mxu1 %vm535_vm1, %v4050_v47 }
 0x198   : > { %3109 = vmatmul.mubr.msk.bf16.gmra.mxu0 %vm535_vm1, %v4050_v47 }
 0x199   : > { %3112 = vmatprep.mubr.msk.bf16.mxu0 %vm535_vm1, %v4133_v39 }
 0x19a   : > { %3059 = vmatmul.mubr.msk.bf16.gmra.mxu1 %vm535_vm1, %v4133_v39 }
 0x19b   : > { %3082 = vmatprep.mubr.msk.bf16.mxu1 %vm535_vm1, %v3827_v53 }
 0x1a0   : > { %3113 = vmatmul.mubr.msk.bf16.gmra.mxu0 %vm535_vm1, %v1185_v9 }
 0x1a2   : > { %3083 = vmatmul.mubr.msk.bf16.vlgmr.msra.gmra.mxu1 %vm535_vm1, %v3878_v46 }
 0x1a3   : > { %3086 = vmatprep.mubr.msk.bf16.mxu1 %vm535_vm1, %v3907_v59 }
 0x1aa   : > { %3087 = vmatmul.mubr.msk.bf16.gmra.mxu1 %vm535_vm1, %v3951_v50 }
 0x1ab   : > { %3090 = vmatprep.mubr.msk.bf16.mxu1 %vm535_vm1, %v3964_v7 }
 0x1b2   : > { %3091 = vmatmul.mubr.msk.bf16.gmra.mxu1 %vm535_vm1, %v4020_v37 }
 0x1b3   : > { %3094 = vmatprep.mubr.msk.bf16.mxu1 %vm535_vm1, %v1174_v35 }
 0x1ba   : > { %3095 = vmatmul.mubr.msk.bf16.gmra.mxu1 %vm535_vm1, %v1175_v34 }
 0x1dc   : > { %v2958_v45 = vpop.f32.mrf.mxu1 }
 0x1de   : > { %v1250_v53 = vpop.f32.mrf.mxu1 }
 0x1e0   : > { %v2959_v16 = vpop.f32.mrf.mxu1 }
 0x1e2   : > { %v1253_v46 = vpop.f32.mrf.mxu1 }
 0x1e5   : > { %v2994_v58 = vpop.f32.mrf.mxu0 }
 0x1e7   : > { %v1500_v59 = vpop.f32.mrf.mxu0 }
 0x1e9   : > { %v2962_v5 = vpop.f32.mrf.mxu1  ;;  %v2995_v50 = vpop.f32.mrf.mxu0 }
 0x1eb   : > { %v1266_v62 = vpop.f32.mrf.mxu1  ;;  %v1503_v7 = vpop.f32.mrf.mxu0 }
 0x1ed   : > { %v2963_v23 = vpop.f32.mrf.mxu1 }
 0x1ef   : > { %v1269_v2 = vpop.f32.mrf.mxu1 }
 0x1f0   : > { %v2998_v37 = vpop.f32.mrf.mxu0 }
 0x1f1   : > { %v2966_v47 = vpop.f32.mrf.mxu1 }
 0x1f2   : > { %v1516_v11 = vpop.f32.mrf.mxu0 }
 0x1f3   : > { %v1282_v31 = vpop.f32.mrf.mxu1 }
 0x1f4   : > { %v2999_v30 = vpop.f32.mrf.mxu0 }
 0x1f5   : > { %v2967_v56 = vpop.f32.mrf.mxu1 }
 0x1f6   : > { %v1519_v27 = vpop.f32.mrf.mxu0 }
 0x1f7   : > { %v1285_v24 = vpop.f32.mrf.mxu1 }
 0x1f8   : > { %v3002_v52 = vpop.f32.mrf.mxu0 }
 0x1fa   : > { %v2970_v34 = vpop.f32.mrf.mxu1  ;;  %v1532_v13 = vpop.f32.mrf.mxu0 }
 0x1fc   : > { %v1298_v33 = vpop.f32.mrf.mxu1  ;;  %v3003_v18 = vpop.f32.mrf.mxu0 }
 0x1fe   : > { %v2971_v44 = vpop.f32.mrf.mxu1  ;;  %v1535_v48 = vpop.f32.mrf.mxu0 }
 0x200   : > { %v4274_v21 = vpop.f32.mrf.mxu1  ;;  %v3006_v39 = vpop.f32.mrf.mxu0 }
 0x202   : > { %v2976_v54 = vpop.f32.mrf.mxu1  ;;  %v1548_v57 = vpop.f32.mrf.mxu0 }
 0x203   : > { %v1383_v10 = vadd.f32 %v2976_v54, %v2958_v45 }
 0x204   : > { %v1374_v9 = vpop.f32.mrf.mxu1  ;;  %v3007_v32 = vpop.f32.mrf.mxu0 }
 0x205   : > { %v1375_v36 = vadd.f32 %v1374_v9, %v1250_v53  ;;  %v4276_v3 = vadd.f32 %v2994_v58, %v1383_v10 }
 0x206   : > { %v2977_v55 = vpop.f32.mrf.mxu1  ;;  %v1551_v40 = vpop.f32.mrf.mxu0 }
 0x207   : > { %v1386_v60 = vadd.f32 %v2977_v55, %v2959_v16  ;;  %v4278_v61 = vadd.f32 %v1500_v59, %v1375_v36 }
 0x208   : > { %v1377_v43 = vpop.f32.mrf.mxu1  ;;  %v4280_v26 = vpop.f32.mrf.mxu0 }
 0x209   : > { %v1378_v51 = vadd.f32 %v1377_v43, %v1253_v46  ;;  %v4282_v15 = vadd.f32 %v2995_v50, %v1386_v60 }
 0x20a   : > { %v2980_v12 = vpop.f32.mrf.mxu1  ;;  %v4284_v28 = vpop.f32.mrf.mxu0 }
 0x20b   : > { %v1399_v20 = vadd.f32 %v2980_v12, %v2962_v5  ;;  %v4286_v8 = vadd.f32 %v1503_v7, %v1378_v51 }
 0x20c   : > { %v1390_v49 = vpop.f32.mrf.mxu1  ;;  %v4288_v25 = vpop.f32.mrf.mxu0 }
 0x20d   : > { %v1391_v19 = vadd.f32 %v1390_v49, %v1266_v62  ;;  %v4290_v42 = vadd.f32 %v2998_v37, %v1399_v20 }
 0x20e   : > { %v2981_v22 = vpop.f32.mrf.mxu1  ;;  %v4292_v14 = vpop.f32.mrf.mxu0 }
 0x20f   : > { %v1402_v35 = vadd.f32 %v2981_v22, %v2963_v23  ;;  %v4294_v6 = vadd.f32 %v1516_v11, %v1391_v19 }
 0x210   : > { %v1393_v63 = vpop.f32.mrf.mxu1  ;;  %v4296_v1 = vpop.f32.mrf.mxu0 }
 0x211   : > { %v1394_v38 = vadd.f32 %v1393_v63, %v1269_v2  ;;  %v4298_v4 = vadd.f32 %v2999_v30, %v1402_v35 }
 0x212   : > { %v2984_v29 = vpop.f32.mrf.mxu1  ;;  %v4300_v41 = vpop.f32.mrf.mxu0 }
 0x213   : > { %v1415_v0 = vadd.f32 %v2984_v29, %v2966_v47  ;;  %v4302_v17 = vadd.f32 %v1519_v27, %v1394_v38 }
 0x214   : > { %v1406_v45 = vpop.f32.mrf.mxu1  ;;  %v4304_v53 = vpop.f32.mrf.mxu0 }
 0x215   : > { %v1407_v16 = vadd.f32 %v1406_v45, %v1282_v31  ;;  %v4306_v46 = vadd.f32 %v3002_v52, %v1415_v0 }
 0x216   : > { %v2985_v58 = vpop.f32.mrf.mxu1  ;;  %v4308_v59 = vpop.f32.mrf.mxu0 }
 0x217   : > { %v1418_v5 = vadd.f32 %v2985_v58, %v2967_v56  ;;  %v4310_v50 = vadd.f32 %v1532_v13, %v1407_v16 }
 0x218   : > { %v1409_v62 = vpop.f32.mrf.mxu1  ;;  %v4312_v7 = vpop.f32.mrf.mxu0 }
 0x219   : > { %v1410_v23 = vadd.f32 %v1409_v62, %v1285_v24  ;;  %v4314_v2 = vadd.f32 %v3003_v18, %v1418_v5 }
 0x21a   : > { %v2988_v37 = vpop.f32.mrf.mxu1  ;;  %v4316_v47 = vpop.f32.mrf.mxu0 }
 0x21b   : > { %v1431_v11 = vadd.f32 %v2988_v37, %v2970_v34  ;;  %v4318_v30 = vadd.f32 %v1535_v48, %v1410_v23 }
 0x21c   : > { %v1422_v31 = vpop.f32.mrf.mxu1  ;;  %v4320_v27 = vpop.f32.mrf.mxu0 }
 0x21d   : > { %v1423_v52 = vadd.f32 %v1422_v31, %v1298_v33  ;;  %v4322_v54 = vadd.f32 %v3006_v39, %v1431_v11 }
 0x21e   : > { %v2989_v56 = vpop.f32.mrf.mxu1  ;;  %v4324_v13 = vpop.f32.mrf.mxu0 }
 0x21f   : > { %4744 = vst [vmem:[#allocation2_spill] sm:$0xff] %v4324_v13  ;;  %v1434_v10 = vadd.f32 %v2989_v56, %v2971_v44  ;;  %v1575_v9 = vadd.f32 %v1548_v57, %v1423_v52 }
 0x220   : > { %v1425_v24 = vpop.f32.mrf.mxu1  ;;  %v4326_v18 = vpop.f32.mrf.mxu0 }
 0x221   : > { %4745 = vst [vmem:[#allocation3_spill] sm:$0xff] %v4326_v18  ;;  %v1426_v36 = vadd.f32 %v1425_v24, %v4274_v21  ;;  %v1578_v55 = vadd.f32 %v3007_v32, %v1434_v10 }
 0x222   : > { %v3012_v34 = vpop.f32.mrf.mxu1  ;;  %v1790_v48 = vpop.f32.mrf.mxu0 }
 0x223   : > { %v1576_v60 = vadd.f32 %v1551_v40, %v1426_v36 }
 0x224   : > { %v1621_v43 = vpop.f32.mrf.mxu1  ;;  %v3043_v51 = vpop.f32.mrf.mxu0 }
 0x226   : > { %v3013_v12 = vpop.f32.mrf.mxu1  ;;  %v1793_v33 = vpop.f32.mrf.mxu0 }
 0x228   : > { %v1624_v39 = vpop.f32.mrf.mxu1  ;;  %v4329_v20 = vpop.f32.mrf.mxu0 }
 0x229   : > { %v1685_v18 = vadd.f32 %v1624_v39, %v4286_v8 }
 0x22a   : > { %v3016_v49 = vpop.f32.mrf.mxu1  ;;  %v4331_v19 = vpop.f32.mrf.mxu0 }
 0x22c   : > { %v1637_v44 = vpop.f32.mrf.mxu1  ;;  %v4333_v57 = vpop.f32.mrf.mxu0 }
 0x22e   : > { %v3017_v22 = vpop.f32.mrf.mxu1  ;;  %v4335_v35 = vpop.f32.mrf.mxu0 }
 0x230   : > { %v1640_v21 = vpop.f32.mrf.mxu1  ;;  %v4337_v32 = vpop.f32.mrf.mxu0 }
 0x231   : > { %4746 = vst [vmem:[#allocation4_spill] sm:$0xff] %v4337_v32  ;;  %v1689_v8 = vadd.f32 %v1640_v21, %v4302_v17 }
 0x232   : > { %v3020_v40 = vpop.f32.mrf.mxu1  ;;  %v4339_v63 = vpop.f32.mrf.mxu0 }
 0x233   : > { %4747 = vst [vmem:[#allocation5_spill] sm:$0xff] %v4339_v63 }
 0x234   : > { %v4341_v38 = vpop.f32.mrf.mxu1  ;;  %v4343_v29 = vpop.f32.mrf.mxu0 }
 0x235   : > { %4748 = vst [vmem:[#allocation6_spill] sm:$0xff] %v4343_v29 }
 0x236   : > { %v4345_v0 = vpop.f32.mrf.mxu1  ;;  %v4347_v45 = vpop.f32.mrf.mxu0 }
 0x237   : > { %4749 = vst [vmem:[#allocation7_spill] sm:$0xff] %v4347_v45 }
 0x238   : > { %v4349_v16 = vpop.f32.mrf.mxu1  ;;  %v4351_v58 = vpop.f32.mrf.mxu0 }
 0x239   : > { %4750 = vst [vmem:[#allocation8_spill] sm:$0xff] %v4351_v58 }
 0x23a   : > { %v4353_v5 = vpop.f32.mrf.mxu1  ;;  %v4355_v62 = vpop.f32.mrf.mxu0 }
 0x23b   : > { %4751 = vst [vmem:[#allocation9_spill] sm:$0xff] %v4355_v62 }
 0x23c   : > { %v1669_v23 = vpop.f32.mrf.mxu1  ;;  %v4357_v37 = vpop.f32.mrf.mxu0 }
 0x23d   : > { %4752 = vst [vmem:[#allocation10_spill] sm:$0xff] %v4357_v37  ;;  %v1696_v11 = vadd.f32 %v1669_v23, %v1575_v9 }
 0x23e   : > { %v3025_v31 = vpop.f32.mrf.mxu1  ;;  %v4359_v52 = vpop.f32.mrf.mxu0 }
 0x23f   : > { %4753 = vst [vmem:[#allocation11_spill] sm:$0xff] %v4359_v52  ;;  %v1699_v56 = vadd.f32 %v3025_v31, %v1578_v55  ;;  %v4361_v10 = vadd.f32 %v1790_v48, %v1696_v11 }
 0x240   : > { %v1672_v24 = vpop.f32.mrf.mxu1  ;;  %v4363_v36 = vpop.f32.mrf.mxu0 }
 0x241   : > { %4754 = vst [vmem:[#allocation12_spill] sm:$0xff] %v4361_v10  ;;  %4755 = vst [vmem:[#allocation13_spill] sm:$0xff] %v4363_v36  ;;  %v1697_v45 = vadd.f32 %v1672_v24, %v1576_v60  ;;  %v4365_v29 = vadd.f32 %v3043_v51, %v1699_v56 }
 0x242   : > { %v3048_v58 = vpop.f32.mrf.mxu1  ;;  %v4367_v63 = vpop.f32.mrf.mxu0 }
 0x243   : > { %4756 = vst [vmem:[#allocation14_spill] sm:$0xff] %v4365_v29  ;;  %4757 = vst [vmem:[#allocation15_spill] sm:$0xff] %v4367_v63  ;;  %v4369_v62 = vadd.f32 %v1793_v33, %v1697_v45  ;;  %v1686_v45 = vadd.f32 %v3012_v34, %v4276_v3  ;;  %v1687_v63 = vadd.f32 %v3013_v12, %v4282_v15 }
 0x244   : > { %v1863_v32 = vpop.f32.mrf.mxu1  ;;  %v4371_v37 = vpop.f32.mrf.mxu0  ;;  %v1806_v12 = vadd.f32 %v4292_v14, %v1685_v18  ;;  %v1692_v14 = vadd.f32 %v4341_v38, %v4310_v50  ;;  %v1695_v18 = vadd.f32 %v4345_v0, %v4314_v2  ;;  %v1693_v2 = vadd.f32 %v4349_v16, %v4318_v30 }
 0x245   : > { %4758 = vst [vmem:[#allocation16_spill] sm:$0xff] %v4369_v62  ;;  %4759 = vst [vmem:[#allocation17_spill] sm:$0xff] %v4371_v37  ;;  %v1684_v37 = vadd.f32 %v1621_v43, %v4278_v61  ;;  %v1807_v52 = vadd.f32 %v4280_v26, %v1686_v45  ;;  %v1688_v61 = vadd.f32 %v1637_v44, %v4294_v6  ;;  %v4766_v45 = vld [vmem:[#allocation4_spill] sm:$0xff] }
 0x246   : > { %v3049_v9 = vpop.f32.mrf.mxu1  ;;  %v4373_v23 = vpop.f32.mrf.mxu0  ;;  %v1808_v15 = vadd.f32 %v4288_v25, %v1687_v63  ;;  %v1691_v26 = vadd.f32 %v3017_v22, %v4298_v4  ;;  %v1810_v22 = vadd.f32 %v4308_v59, %v1689_v8  ;;  %v1813_v30 = vadd.f32 %v4316_v47, %v1692_v14 }
 0x247   : > { %4760 = vst [vmem:[#allocation18_spill] sm:$0xff] %v4373_v23  ;;  %v1805_v3 = vadd.f32 %v4284_v28, %v1684_v37  ;;  %v1694_v28 = vadd.f32 %v3020_v40, %v4306_v46  ;;  %v1809_v25 = vadd.f32 %v4300_v41, %v1688_v61  ;;  %v4438_v40 = vld [vmem:[%s4737_s8] ss:$0 sm:$0xff] }
 0x248   : > { %v1866_v55 = vpop.f32.mrf.mxu1  ;;  %v3102_v11 = vpop.f32.mrf.mxu0  ;;  %v1929_v37 = vadd.f32 %v3049_v9, %v1808_v15  ;;  %v1812_v46 = vadd.f32 %v4304_v53, %v1691_v26  ;;  %v1698_v53 = vadd.f32 %v4353_v5, %v4322_v54  ;;  %v1816_v54 = vadd.f32 %v4320_v27, %v1695_v18  ;;  %v4767_v15 = vld [vmem:[#allocation5_spill] sm:$0xff] }
 0x249   : > { %v1926_v43 = vadd.f32 %v1863_v32, %v1805_v3 }
 0x24a   : > { %v3052_v48 = vpop.f32.mrf.mxu1  ;;  %v2226_v36 = vpop.f32.mrf.mxu0  ;;  %v2050_v50 = vadd.f32 %v4333_v57, %v1929_v37 }
 0x24b   : > { %v2047_v17 = vadd.f32 %v4331_v19, %v1926_v43  ;;  %v1815_v19 = vadd.f32 %v4312_v7, %v1694_v28  ;;  %v4768_v28 = vld [vmem:[#allocation6_spill] sm:$0xff] }
 0x24c   : > { %v1879_v31 = vpop.f32.mrf.mxu1  ;;  %v4377_v56 = vpop.f32.mrf.mxu0 }
 0x24d   : > { %v1930_v7 = vadd.f32 %v1879_v31, %v1809_v25 }
 0x24e   : > { %v3053_v10 = vpop.f32.mrf.mxu1  ;;  %v4384_v62 = vpop.f32.mrf.mxu0 }
 0x24f   : > { %v1933_v9 = vadd.f32 %v3053_v10, %v1812_v46  ;;  %v4765_v10 = vld [vmem:[#allocation3_spill] sm:$0xff]  ;;  %v2051_v26 = vadd.f32 %v4767_v15, %v1930_v7 }
 0x250   : > { %v1882_v60 = vpop.f32.mrf.mxu1  ;;  %v4394_v13 = vpop.f32.mrf.mxu0 }
 0x251   : > { %v2054_v37 = vadd.f32 %v4768_v28, %v1933_v9 }
 0x252   : > { %v4375_v51 = vpop.f32.mrf.mxu1  ;;  %v4407_v39 = vpop.f32.mrf.mxu0 }
 0x253   : > { %v1936_v31 = vadd.f32 %v4375_v51, %v1815_v19 }
 0x254   : > { %v4379_v24 = vpop.f32.mrf.mxu1 }
 0x255   : > { %4761 = vst [vmem:[#allocation19_spill] sm:$0xff] %v4379_v24 }
 0x256   : > { %v4381_v33 = vpop.f32.mrf.mxu1 }
 0x257   : > { %4762 = vst [vmem:[#allocation20_spill] sm:$0xff] %v4381_v33  ;;  %v1928_v33 = vadd.f32 %v3048_v58, %v1807_v52 }
 0x258   : > { %v4386_v23 = vpop.f32.mrf.mxu1 }
 0x259   : > { %4763 = vst [vmem:[#allocation21_spill] sm:$0xff] %v4386_v23  ;;  %v1690_v23 = vadd.f32 %v3016_v49, %v4290_v42  ;;  %v2049_v42 = vadd.f32 %v4329_v20, %v1928_v33  ;;  %v1927_v49 = vadd.f32 %v1866_v55, %v1806_v12  ;;  %v4422_v20 = vpop.f32.mrf.mxu0 }
 0x25a   : > { %v4389_v29 = vpop.f32.mrf.mxu1 }
 0x25b   : > { %v1811_v44 = vadd.f32 %v4296_v1, %v1690_v23  ;;  %v4427_v1 = vld [vmem:[%s4736_s7] ss:$0 sm:$0xff]  ;;  %v2048_v38 = vadd.f32 %v4335_v35, %v1927_v49  ;;  %v1931_v23 = vadd.f32 %v1882_v60, %v1810_v22  ;;  %v2245_v16 = vpop.f32.mrf.mxu0  ;;  %v1819_v60 = vadd.f32 %v4765_v10, %v1698_v53  ;;  %v4771_v22 = vld [vmem:[#allocation8_spill] sm:$0xff] }
 0x25c   : > { %v4396_v24 = vpop.f32.mrf.mxu1 }
 0x25d   : > { %v1932_v59 = vadd.f32 %v3052_v48, %v1811_v44 }
 0x25e   : > { %v4399_v34 = vpop.f32.mrf.mxu1  ;;  %v4772_v19 = vld [vmem:[#allocation20_spill] sm:$0xff] }
 0x25f   : > { %v2053_v47 = vadd.f32 %v4766_v45, %v1932_v59 }
 0x260   : > { %v4409_v58 = vpop.f32.mrf.mxu1  ;;  %v4774_v9 = vld [vmem:[#allocation21_spill] sm:$0xff] }
 0x262   : > { %v3084_v6 = vpop.f32.mrf.mxu1 }
 0x263   : > { %v2170_v4 = vadd.f32 %v3084_v6, %v2049_v42  ;;  %v4769_v42 = vld [vmem:[#allocation7_spill] sm:$0xff] }
 0x264   : > { %v2105_v41 = vpop.f32.mrf.mxu1  ;;  %v2052_v49 = vadd.f32 %v4769_v42, %v1931_v23  ;;  %v4770_v6 = vld [vmem:[#allocation19_spill] sm:$0xff] }
 0x265   : > { %v2291_v21 = vadd.f32 %v3102_v11, %v2170_v4  ;;  %v2168_v32 = vadd.f32 %v2105_v41, %v2047_v17  ;;  %v1934_v44 = vadd.f32 %v4770_v6, %v1813_v30  ;;  %v2057_v41 = vadd.f32 %v4771_v22, %v1936_v31 }
 0x266   : > { %v3085_v63 = vpop.f32.mrf.mxu1  ;;  %v1940_v31 = vadd.f32 %v4389_v29, %v1819_v60 }
 0x267   : > { %v2314_v0 = vmul.f32 %v4427_v1, %v2291_v21  ;;  %v2289_v52 = vadd.f32 %v2226_v36, %v2168_v32  ;;  %v2171_v57 = vadd.f32 %v3085_v63, %v2050_v50  ;;  %v4764_v36 = vld [vmem:[#allocation2_spill] sm:$0xff]  ;;  %v1937_v21 = vadd.f32 %v4772_v19, %v1816_v54 }
 0x268   : > { %v2108_v5 = vpop.f32.mrf.mxu1  ;;  %v1814_v33 = vadd.f32 %v4764_v36, %v1693_v2 }
 0x269   : > { %v4445_v55 = vadd.f32 %v4438_v40, %v2314_v0  ;;  %v2312_v48 = vmul.f32 %v4427_v1, %v2289_v52  ;;  %v2292_v35 = vadd.f32 %v4377_v56, %v2171_v57  ;;  %v2169_v11 = vadd.f32 %v2108_v5, %v2048_v38  ;;  %v3110_v56 = vpop.f32.mrf.mxu0  ;;  %v4773_v52 = vld [vmem:[#allocation9_spill] sm:$0xff] }
 0x26a   : > { %v3088_v3 = vpop.f32.mrf.mxu1  ;;  %v2055_v57 = vadd.f32 %v4773_v52, %v1934_v44  ;;  %v1935_v23 = vadd.f32 %v4774_v9, %v1814_v33 }
 0x26b   : > { %v2353_v27 = vmin.f32 %v4445_v55, 20.0  ;;  %v4455_v61 = vadd.f32 %v4438_v40, %v2312_v48  ;;  %v2315_v43 = vmul.f32 %v4427_v1, %v2292_v35  ;;  %v2290_v8 = vadd.f32 %v4384_v62, %v2169_v11  ;;  %v2258_v2 = vpop.f32.mrf.mxu0 }
 0x26c   : > { %v2174_v51 = vadd.f32 %v3088_v3, %v2053_v47  ;;  %v2121_v12 = vpop.f32.mrf.mxu1  ;;  %vm2497_vm0 = vcmp.gt.f32.partialorder %v4445_v55, 20.0 }
 0x26d   : > { %v2371_v25 = vmul.f32 1.442695, %v2353_v27  ;;  %v2351_v4 = vmin.f32 %v4455_v61, 20.0  ;;  %v4465_v17 = vadd.f32 %v4438_v40, %v2315_v43  ;;  %v2313_v14 = vmul.f32 %v4427_v1, %v2290_v8  ;;  %v3111_v36 = vpop.f32.mrf.mxu0 }
 0x26e   : > { %v2295_v18 = vadd.f32 %v4394_v13, %v2174_v51  ;;  %v2172_v46 = vadd.f32 %v2121_v12, %v2051_v26  ;;  %v3089_v62 = vpop.f32.mrf.mxu1  ;;  %v4775_v26 = vld [vmem:[#allocation10_spill] sm:$0xff]  ;;  %vm2495_vm7 = vcmp.gt.f32.partialorder %v4455_v61, 20.0 }
 0x26f   : > { %3246 = vpow2.f32 %v2371_v25  ;;  %v2367_v32 = vmul.f32 1.442695, %v2351_v4  ;;  %v2354_v50 = vmin.f32 %v4465_v17, 20.0  ;;  %v4473_v53 = vadd.f32 %v4438_v40, %v2313_v14  ;;  %v4776_v25 = vld [vmem:[#allocation11_spill] sm:$0xff]  ;;  %v4777_v14 = vld [vmem:[#allocation13_spill] sm:$0xff] }
 0x270   : > { %v2318_v59 = vmul.f32 %v4427_v1, %v2295_v18  ;;  %v2293_v63 = vadd.f32 %v4407_v39, %v2172_v46  ;;  %v2175_v38 = vadd.f32 %v3089_v62, %v2054_v37  ;;  %v2124_v13 = vpop.f32.mrf.mxu1  ;;  %v2058_v29 = vadd.f32 %v4775_v26, %v1937_v21  ;;  %v2261_v37 = vpop.f32.mrf.mxu0 }
 0x271   : > { %3248 = vpow2.f32 %v2367_v32  ;;  %v2373_v7 = vmul.f32 1.442695, %v2354_v50  ;;  %v2173_v0 = vadd.f32 %v2124_v13, %v2052_v49  ;;  %v2352_v30 = vmin.f32 %v4473_v53, 20.0 }
 0x272   : > { %v4481_v54 = vadd.f32 %v4438_v40, %v2318_v59  ;;  %v2316_v5 = vmul.f32 %v4427_v1, %v2293_v63  ;;  %v3092_v48 = vpop.f32.mrf.mxu1  ;;  %v2296_v39 = vadd.f32 %v4422_v20, %v2175_v38  ;;  %v2056_v4 = vadd.f32 %v4776_v25, %v1935_v23  ;;  %v4778_v59 = vld [vmem:[#allocation12_spill] sm:$0xff]  ;;  %v3114_v38 = vpop.f32.mrf.mxu0 }
 0x273   : > { %3250 = vpow2.f32 %v2373_v7  ;;  %v2294_v35 = vadd.f32 %v2245_v16, %v2173_v0  ;;  %v2178_v11 = vadd.f32 %v3092_v48, %v2057_v41  ;;  %v2369_v10 = vmul.f32 1.442695, %v2352_v30 }
 0x274   : > { %v2357_v45 = vmin.f32 %v4481_v54, 20.0  ;;  %v4488_v33 = vadd.f32 %v4438_v40, %v2316_v5  ;;  %v2137_v47 = vpop.f32.mrf.mxu1  ;;  %v2319_v3 = vmul.f32 %v4427_v1, %v2296_v39  ;;  %v2061_v18 = vadd.f32 %v4777_v14, %v1940_v31 }
 0x275   : > { %v2317_v27 = vmul.f32 %v4427_v1, %v2294_v35  ;;  %v2299_v43 = vadd.f32 %v3110_v56, %v2178_v11  ;;  %v2176_v15 = vadd.f32 %v2137_v47, %v2055_v57  ;;  %3252 = vpow2.f32 %v2369_v10 }
 0x276   : > { %v2379_v20 = vmul.f32 1.442695, %v2357_v45  ;;  %v2355_v16 = vmin.f32 %v4488_v33, 20.0  ;;  %v3093_v60 = vpop.f32.mrf.mxu1  ;;  %v4495_v8 = vadd.f32 %v4438_v40, %v2319_v3  ;;  %v1938_v63 = vadd.f32 %v4396_v24, %v4778_v59 }
 0x277   : > { %v4498_v51 = vadd.f32 %v4438_v40, %v2317_v27  ;;  %v2322_v12 = vmul.f32 %v4427_v1, %v2299_v43  ;;  %v2297_v28 = vadd.f32 %v2258_v2, %v2176_v15  ;;  %v2179_v42 = vadd.f32 %v3093_v60, %v2058_v29  ;;  %v4780_v15 = vld [vmem:[#allocation14_spill] sm:$0xff] }
 0x278   : > { %3254 = vpow2.f32 %v2379_v20  ;;  %v2375_v56 = vmul.f32 1.442695, %v2355_v16  ;;  %v2140_v49 = vpop.f32.mrf.mxu1  ;;  %v2358_v6 = vmin.f32 %v4495_v8, 20.0  ;;  %v1941_v20 = vadd.f32 %v4399_v34, %v4780_v15 }
 0x279   : > { %v2356_v44 = vmin.f32 %v4498_v51, 20.0  ;;  %v4506_v46 = vadd.f32 %v4438_v40, %v2322_v12  ;;  %v2320_v62 = vmul.f32 %v4427_v1, %v2297_v28  ;;  %v2300_v22 = vadd.f32 %v3111_v36, %v2179_v42  ;;  %v4779_v36 = vld [vmem:[#allocation15_spill] sm:$0xff] }
 0x27a   : > { %3256 = vpow2.f32 %v2375_v56  ;;  %v3096_v41 = vpop.f32.mrf.mxu1  ;;  %v2381_v19 = vmul.f32 1.442695, %v2358_v6  ;;  %v2177_v32 = vadd.f32 %v2140_v49, %v2056_v4  ;;  %v2059_v10 = vadd.f32 %v4779_v36, %v1938_v63 }
 0x27b   : > { %v2377_v21 = vmul.f32 1.442695, %v2356_v44  ;;  %v2182_v50 = vadd.f32 %v3096_v41, %v2061_v18  ;;  %v2361_v13 = vmin.f32 %v4506_v46, 20.0  ;;  %v4513_v7 = vadd.f32 %v4438_v40, %v2320_v62  ;;  %v2274_v44 = vpop.f32.mrf.mxu0 }
 0x27c   : > { %v3247_v2 = vpop.eup %3246  ;;  %v2323_v0 = vmul.f32 %v4427_v1, %v2300_v22  ;;  %3258 = vpow2.f32 %v2381_v19  ;;  %v2298_v57 = vadd.f32 %v2261_v37, %v2177_v32  ;;  %v2153_v45 = vpop.f32.mrf.mxu1  ;;  %v4781_v19 = vld [vmem:[#allocation17_spill] sm:$0xff]  ;;  %v4782_v32 = vld [vmem:[#allocation16_spill] sm:$0xff]  ;;  %vm2498_vm8 = vcmp.gt.f32.partialorder %v4465_v17, 20.0 }
 0x27d   : > { %v2401_v52 = vadd.f32 2.0, %v3247_v2  ;;  %v2303_v9 = vadd.f32 %v3114_v38, %v2182_v50  ;;  %3260 = vpow2.f32 %v2377_v21  ;;  %v2387_v30 = vmul.f32 1.442695, %v2361_v13 }
 0x27e   : > { %v3249_v23 = vpop.eup %3248  ;;  %v2359_v5 = vmin.f32 %v4513_v7, 20.0  ;;  %v4520_v39 = vadd.f32 %v4438_v40, %v2323_v0  ;;  %v2321_v35 = vmul.f32 %v4427_v1, %v2298_v57  ;;  %v2180_v28 = vadd.f32 %v2153_v45, %v2059_v10  ;;  %v3097_v18 = vpop.f32.mrf.mxu1 }
 0x27f   : > { %v4517_v48 = vmul.f32 %v3247_v2, %v2401_v52  ;;  %v2399_v24 = vadd.f32 2.0, %v3249_v23  ;;  %3262 = vpow2.f32 %v2387_v30  ;;  %v2326_v43 = vmul.f32 %v4427_v1, %v2303_v9  ;;  %v3115_v57 = vpop.f32.mrf.mxu0 }
 0x280   : > { %v3251_v11 = vpop.eup %3250  ;;  %v2383_v31 = vmul.f32 1.442695, %v2359_v5  ;;  %v2362_v16 = vmin.f32 %v4520_v39, 20.0  ;;  %v4532_v26 = vadd.f32 %v4438_v40, %v2321_v35  ;;  %v2301_v41 = vadd.f32 %v2274_v44, %v2180_v28 }
 0x281   : > { %v2449_v47 = vadd.f32 2.0, %v4517_v48  ;;  %v4525_v3 = vmul.f32 %v3249_v23, %v2399_v24  ;;  %v2402_v27 = vadd.f32 2.0, %v3251_v11  ;;  %v4540_v6 = vadd.f32 %v4438_v40, %v2326_v43 }
 0x282   : > { %3264 = vpow2.f32 %v2383_v31  ;;  %v3253_v29 = vpop.eup %3252  ;;  %v2389_v56 = vmul.f32 1.442695, %v2362_v16  ;;  %v2360_v42 = vmin.f32 %v4532_v26, 20.0  ;;  %v2062_v21 = vadd.f32 %v4781_v19, %v1941_v20  ;;  %v4783_v31 = vld [vmem:[#allocation18_spill] sm:$0xff] }
 0x283   : > { %3266 = vrcp.f32 %v2449_v47  ;;  %v2447_v60 = vadd.f32 2.0, %v4525_v3  ;;  %v4535_v12 = vmul.f32 %v3251_v11, %v2402_v27  ;;  %v2400_v37 = vadd.f32 2.0, %v3253_v29 }
 0x284   : > { %v2385_v14 = vmul.f32 1.442695, %v2360_v42  ;;  %v2365_v22 = vmin.f32 %v4540_v6, 20.0  ;;  %v1939_v50 = vadd.f32 %v4409_v58, %v4782_v32  ;;  %v2324_v13 = vmul.f32 %v4427_v1, %v2301_v41 }
 0x285   : > { %v3255_v49 = vpop.eup %3254  ;;  %3268 = vrcp.f32 %v2447_v60  ;;  %v2450_v34 = vadd.f32 2.0, %v4535_v12  ;;  %v4542_v25 = vmul.f32 %v3253_v29, %v2400_v37  ;;  %v2183_v0 = vadd.f32 %v3097_v18, %v2062_v21  ;;  %v2156_v37 = vpop.f32.mrf.mxu1 }
 0x286   : > { %v2405_v4 = vadd.f32 2.0, %v3255_v49  ;;  %3270 = vpow2.f32 %v2389_v56  ;;  %v2395_v38 = vmul.f32 1.442695, %v2365_v22  ;;  %v4556_v58 = vadd.f32 %v4438_v40, %v2324_v13 }
 0x287   : > { %v3257_v62 = vpop.eup %3256  ;;  %3272 = vrcp.f32 %v2450_v34  ;;  %v2448_v2 = vadd.f32 2.0, %v4542_v25  ;;  %v2304_v24 = vadd.f32 %v3115_v57, %v2183_v0  ;;  %v2060_v36 = vadd.f32 %v4783_v31, %v1939_v50  ;;  %v3310_v50 = vld [vmem:[%s3470_s27 + $0x10] sm:$0xff]  ;;  %v3311_v57 = vld [vmem:[%s3470_s27] sm:$0xff] }
 0x288   : > { %v4549_v59 = vmul.f32 %v3255_v49, %v2405_v4  ;;  %v2403_v63 = vadd.f32 2.0, %v3257_v62  ;;  %3274 = vpow2.f32 %v2385_v14  ;;  %v2363_v47 = vmin.f32 %v4556_v58, 20.0 }
 0x289   : > { %v3259_v52 = vpop.eup %3258  ;;  %3276 = vrcp.f32 %v2448_v2  ;;  %v2327_v27 = vmul.f32 %v4427_v1, %v2304_v24  ;;  %v2433_v16 = vmul.f32 %v4517_v48, %v4445_v55  ;;  %v2431_v42 = vmul.f32 %v4525_v3, %v4455_v61 }
 0x28a   : > { %v2453_v9 = vadd.f32 2.0, %v4549_v59  ;;  %v4553_v23 = vmul.f32 %v3257_v62, %v2403_v63  ;;  %v3261_v30 = vpop.eup %3260  ;;  %v2406_v5 = vadd.f32 2.0, %v3259_v52  ;;  %3278 = vpow2.f32 %v2395_v38 }
 0x28b   : > { %v2404_v11 = vadd.f32 2.0, %v3261_v30  ;;  %v2391_v60 = vmul.f32 1.442695, %v2363_v47  ;;  %v4572_v28 = vadd.f32 %v4438_v40, %v2327_v27  ;;  %v2434_v48 = vmul.f32 %v4535_v12, %v4465_v17 }
 0x28c   : > { %3280 = vrcp.f32 %v2453_v9  ;;  %v2451_v35 = vadd.f32 2.0, %v4553_v23  ;;  %v3263_v10 = vpop.eup %3262  ;;  %v4561_v45 = vmul.f32 %v3259_v52, %v2406_v5  ;;  %v2181_v3 = vadd.f32 %v2156_v37, %v2060_v36  ;;  %v3312_v36 = vld [vmem:[%s3470_s27 + $0x18] sm:$0xff] }
 0x28d   : > { %v4566_v43 = vmul.f32 %v3261_v30, %v2404_v11  ;;  %v2409_v15 = vadd.f32 2.0, %v3263_v10  ;;  %v2366_v14 = vmin.f32 %v4572_v28, 20.0  ;;  %v2432_v30 = vmul.f32 %v4542_v25, %v4473_v53 }
 0x28e   : > { %3282 = vrcp.f32 %v2451_v35  ;;  %v2454_v29 = vadd.f32 2.0, %v4561_v45  ;;  %v2437_v25 = vmul.f32 %v4549_v59, %v4481_v54  ;;  %vm2496_vm2 = vcmp.gt.f32.partialorder %v4473_v53, 20.0 }
 0x28f   : > { %v3265_v20 = vpop.eup %3264  ;;  %v2452_v49 = vadd.f32 2.0, %v4566_v43  ;;  %v4577_v34 = vmul.f32 %v3263_v10, %v2409_v15  ;;  %v2397_v21 = vmul.f32 1.442695, %v2366_v14  ;;  %v2435_v59 = vmul.f32 %v4553_v23, %v4488_v33 }
 0x290   : > { %v3267_v56 = vpop.eup %3266  ;;  %v2407_v44 = vadd.f32 2.0, %v3265_v20  ;;  %3284 = vrcp.f32 %v2454_v29  ;;  %vm2501_vm3 = vcmp.gt.f32.partialorder %v4481_v54, 20.0  ;;  %vm2499_vm4 = vcmp.gt.f32.partialorder %v4488_v33, 20.0 }
 0x291   : > { %v2481_v4 = vmul.f32 %v3267_v56, %v2433_v16  ;;  %3286 = vrcp.f32 %v2452_v49  ;;  %v2457_v62 = vadd.f32 2.0, %v4577_v34  ;;  %v3313_v56 = vld [vmem:[%s3470_s27 + $0x8] sm:$0xff]  ;;  %v2438_v14 = vmul.f32 %v4561_v45, %v4495_v8 }
 0x292   : > { %v3269_v18 = vpop.eup %3268  ;;  %v4583_v22 = vmul.f32 %v3265_v20, %v2407_v44  ;;  %3288 = vpow2.f32 %v2391_v60  ;;  %vm2502_vm5 = vcmp.gt.f32.partialorder %v4495_v8, 20.0  ;;  %vm2500_vm6 = vcmp.gt.f32.partialorder %v4498_v51, 20.0 }
 0x293   : > { %v3271_v41 = vpop.eup %3270  ;;  %v2513_v12 = vsel %vm2497_vm0, %v4445_v55, %v2481_v4  ;;  %v2479_v19 = vmul.f32 %v3269_v18, %v2431_v42  ;;  %3290 = vrcp.f32 %v2457_v62  ;;  %v2277_v55 = vpop.f32.mrf.mxu0  ;;  %v2436_v62 = vmul.f32 %v4566_v43, %v4498_v51 }
 0x294   : > { %v3273_v32 = vpop.eup %3272  ;;  %v2529_v2 = vadd.f32 %v3310_v50, %v2513_v12  ;;  %v2455_v63 = vadd.f32 2.0, %v4583_v22  ;;  %v2410_v0 = vadd.f32 2.0, %v3271_v41  ;;  %3292 = vpow2.f32 %v2397_v21 }
 0x295   : > { %v2511_v38 = vsel %vm2495_vm7, %v4455_v61, %v2479_v19  ;;  %v2482_v13 = vmul.f32 %v3273_v32, %v2434_v48  ;;  %v3275_v52 = vpop.eup %3274  ;;  %v2302_v5 = vadd.f32 %v2277_v55, %v2181_v3  ;;  %v3315_v19 = vld [vmem:[%s3470_s27 + $0x20] sm:$0xff]  ;;  %vm2505_vm9 = vcmp.gt.f32.partialorder %v4506_v46, 20.0 }
 0x296   : > { %2545 = vst.msk [vmem:[%s4590_s19 + $0x10] sm:$0xff] %vm535_vm1, %v2529_v2  ;;  %v2527_v9 = vadd.f32 %v3311_v57, %v2511_v38  ;;  %3294 = vrcp.f32 %v2455_v63  ;;  %v3277_v24 = vpop.eup %3276  ;;  %v4609_v35 = vmul.f32 %v3271_v41, %v2410_v0  ;;  %v2408_v11 = vadd.f32 2.0, %v3275_v52 }
 0x297   : > { %v2514_v61 = vsel %vm2498_vm8, %v4465_v17, %v2482_v13  ;;  %v3279_v31 = vpop.eup %3278  ;;  %v2480_v47 = vmul.f32 %v3277_v24, %v2432_v30  ;;  %v2325_v27 = vmul.f32 %v4427_v1, %v2302_v5  ;;  %v3316_v13 = vld [vmem:[%s3470_s27 + $0x38] sm:$0xff]  ;;  %vm2503_vm10 = vcmp.gt.f32.partialorder %v4513_v7, 20.0 }
 0x298   : > { %2543 = vst.msk [vmem:[%s4590_s19] sm:$0xff] %vm535_vm1, %v2527_v9  ;;  %v2530_v10 = vadd.f32 %v3312_v36, %v2514_v61  ;;  %v2458_v17 = vadd.f32 2.0, %v4609_v35  ;;  %v4619_v20 = vmul.f32 %v3275_v52, %v2408_v11  ;;  %v2413_v16 = vadd.f32 2.0, %v3279_v31  ;;  %v3317_v9 = vld [vmem:[%s3470_s27 + $0x28] sm:$0xff] }
 0x299   : > { %v3281_v15 = vpop.eup %3280  ;;  %v2512_v29 = vsel %vm2496_vm2, %v4473_v53, %v2480_v47  ;;  %v4627_v1 = vadd.f32 %v4438_v40, %v2325_v27  ;;  %v3314_v40 = vld [vmem:[%s3470_s27 + $0x30] sm:$0xff]  ;;  %vm2506_vm11 = vcmp.gt.f32.partialorder %v4520_v39, 20.0  ;;  %vm2504_vm12 = vcmp.gt.f32.partialorder %v4532_v26, 20.0 }
 0x29a   : > { %2546 = vst.msk [vmem:[%s4590_s19 + $0x18] sm:$0xff] %vm535_vm1, %v2530_v10  ;;  %v2485_v60 = vmul.f32 %v3281_v15, %v2437_v25  ;;  %v2528_v42 = vadd.f32 %v3313_v56, %v2512_v29  ;;  %3296 = vrcp.f32 %v2458_v17  ;;  %v2456_v49 = vadd.f32 2.0, %v4619_v20  ;;  %v3319_v10 = vld [vmem:[%s3470_s27 + $0x40] sm:$0xff] }
 0x29b   : > { %v3283_v37 = vpop.eup %3282  ;;  %v4633_v53 = vmul.f32 %v3279_v31, %v2413_v16  ;;  %v2364_v23 = vmin.f32 %v4627_v1, 20.0  ;;  %v2440_v17 = vmul.f32 %v4619_v20, %v4532_v26  ;;  %vm2509_vm13 = vcmp.gt.f32.partialorder %v4540_v6, 20.0 }
 0x29c   : > { %v2517_v44 = vsel %vm2501_vm3, %v4481_v54, %v2485_v60  ;;  %v2483_v4 = vmul.f32 %v3283_v37, %v2435_v59  ;;  %2544 = vst.msk [vmem:[%s4590_s19 + $0x8] sm:$0xff] %vm535_vm1, %v2528_v42  ;;  %3298 = vrcp.f32 %v2456_v49  ;;  %v3321_v42 = vld [vmem:[%s3470_s27 + $0x48] sm:$0xff]  ;;  %vm2507_vm14 = vcmp.gt.f32.partialorder %v4556_v58, 20.0 }
 0x29d   : > { %v2533_v48 = vadd.f32 %v3314_v40, %v2517_v44  ;;  %v3285_v18 = vpop.eup %3284  ;;  %v2461_v3 = vadd.f32 2.0, %v4633_v53  ;;  %v2393_v41 = vmul.f32 1.442695, %v2364_v23  ;;  %v2445_v59 = vmul.f32 %v4633_v53, %v4540_v6  ;;  %v3322_v23 = vld [vmem:[%s3470_s27 + $0x70] sm:$0xff] }
 0x29e   : > { %v2515_v54 = vsel %vm2499_vm4, %v4488_v33, %v2483_v4  ;;  %v3287_v12 = vpop.eup %3286  ;;  %v2486_v32 = vmul.f32 %v3285_v18, %v2438_v14  ;;  %v2441_v33 = vmul.f32 %v4577_v34, %v4506_v46  ;;  %v2439_v34 = vmul.f32 %v4583_v22, %v4513_v7 }
 0x29f   : > { %2549 = vst.msk [vmem:[%s4590_s19 + $0x30] sm:$0xff] %vm535_vm1, %v2533_v48  ;;  %v2531_v21 = vadd.f32 %v3315_v19, %v2515_v54  ;;  %v3289_v50 = vpop.eup %3288  ;;  %v2484_v45 = vmul.f32 %v3287_v12, %v2436_v62  ;;  %3300 = vrcp.f32 %v2461_v3  ;;  %vm2510_vm15 = vcmp.gt.f32.partialorder %v4572_v28, 20.0 }
 0x2a0   : > { %v3291_v43 = vpop.eup %3290  ;;  %v2518_v2 = vsel %vm2502_vm5, %v4495_v8, %v2486_v32  ;;  %v2411_v63 = vadd.f32 2.0, %v3289_v50  ;;  %3302 = vpow2.f32 %v2393_v41  ;;  %v3323_v41 = vld [vmem:[%s3470_s27 + $0x60] sm:$0xff]  ;;  %vm2508_vm0 = vcmp.gt.f32.partialorder %v4627_v1, 20.0 }
 0x2a1   : > { %2547 = vst.msk [vmem:[%s4590_s19 + $0x20] sm:$0xff] %vm535_vm1, %v2531_v21  ;;  %v3293_v38 = vpop.eup %3292  ;;  %v2534_v55 = vadd.f32 %v3316_v13, %v2518_v2  ;;  %v2516_v0 = vsel %vm2500_vm6, %v4498_v51, %v2484_v45  ;;  %v2489_v52 = vmul.f32 %v3291_v43, %v2441_v33  ;;  %v3318_v51 = vld [vmem:[%s3470_s27 + $0x50] sm:$0xff]  ;;  %v3324_v21 = vld [vmem:[%s3470_s27 + $0x78] sm:$0xff]  ;;  %v3325_v43 = vld [vmem:[%s3470_s27 + $0x68] sm:$0xff] }
 0x2a2   : > { %v2532_v8 = vadd.f32 %v3317_v9, %v2516_v0  ;;  %v2427_v30 = vmul.f32 %v3289_v50, %v2411_v63  ;;  %v2414_v5 = vadd.f32 2.0, %v3293_v38 }
 0x2a3   : > { %v3295_v57 = vpop.eup %3294  ;;  %2550 = vst.msk [vmem:[%s4590_s19 + $0x38] sm:$0xff] %vm535_vm1, %v2534_v55  ;;  %v2521_v24 = vsel %vm2505_vm9, %v4506_v46, %v2489_v52  ;;  %v2442_v46 = vmul.f32 %v4609_v35, %v4520_v39  ;;  %v3320_v35 = vld [vmem:[%s3470_s27 + $0x58] sm:$0xff] }
 0x2a4   : > { %v2487_v61 = vmul.f32 %v3295_v57, %v2439_v34  ;;  %2548 = vst.msk [vmem:[%s4590_s19 + $0x28] sm:$0xff] %vm535_vm1, %v2532_v8  ;;  %v2537_v11 = vadd.f32 %v3318_v51, %v2521_v24  ;;  %v2459_v22 = vadd.f32 2.0, %v2427_v30  ;;  %v2430_v31 = vmul.f32 %v3293_v38, %v2414_v5 }
 0x2a6   : > { %v2519_v36 = vsel %vm2503_vm10, %v4513_v7, %v2487_v61  ;;  %2553 = vst.msk [vmem:[%s4590_s19 + $0x50] sm:$0xff] %vm535_vm1, %v2537_v11  ;;  %3304 = vrcp.f32 %v2459_v22  ;;  %v2462_v25 = vadd.f32 2.0, %v2430_v31  ;;  %v2446_v54 = vmul.f32 %v2430_v31, %v4572_v28 }
 0x2a7   : > { %v2535_v47 = vadd.f32 %v3319_v10, %v2519_v36  ;;  %v3297_v27 = vpop.eup %3296 }
 0x2a8   : > { %v2490_v15 = vmul.f32 %v3297_v27, %v2442_v46  ;;  %3306 = vrcp.f32 %v2462_v25 }
 0x2a9   : > { %2551 = vst.msk [vmem:[%s4590_s19 + $0x40] sm:$0xff] %vm535_vm1, %v2535_v47  ;;  %v3299_v7 = vpop.eup %3298 }
 0x2aa   : > { %v2522_v16 = vsel %vm2506_vm11, %v4520_v39, %v2490_v15  ;;  %v2488_v29 = vmul.f32 %v3299_v7, %v2440_v17 }
 0x2ab   : > { %v2538_v60 = vadd.f32 %v3320_v35, %v2522_v16 }
 0x2ac   : > { %v3301_v37 = vpop.eup %3300  ;;  %v2520_v20 = vsel %vm2504_vm12, %v4532_v26, %v2488_v29  ;;  %v2443_v26 = vmul.f32 %v2427_v30, %v4556_v58 }
 0x2ad   : > { %v3303_v56 = vpop.eup %3302  ;;  %2554 = vst.msk [vmem:[%s4590_s19 + $0x58] sm:$0xff] %vm535_vm1, %v2538_v60  ;;  %v2536_v49 = vadd.f32 %v3321_v42, %v2520_v20  ;;  %v2493_v44 = vmul.f32 %v3301_v37, %v2445_v59 }
 0x2ae   : > { %v2412_v39 = vadd.f32 2.0, %v3303_v56 }
 0x2af   : > { %2552 = vst.msk [vmem:[%s4590_s19 + $0x48] sm:$0xff] %vm535_vm1, %v2536_v49  ;;  %v2525_v4 = vsel %vm2509_vm13, %v4540_v6, %v2493_v44 }
 0x2b0   : > { %v2541_v40 = vadd.f32 %v3322_v23, %v2525_v4  ;;  %v2428_v53 = vmul.f32 %v3303_v56, %v2412_v39 }
 0x2b2   : > { %2557 = vst.msk [vmem:[%s4590_s19 + $0x70] sm:$0xff] %vm535_vm1, %v2541_v40  ;;  %v2460_v48 = vadd.f32 2.0, %v2428_v53  ;;  %v2444_v50 = vmul.f32 %v2428_v53, %v4627_v1 }
 0x2b3   : > { %v3305_v14 = vpop.eup %3304 }
 0x2b4   : > { %v2491_v18 = vmul.f32 %v3305_v14, %v2443_v26  ;;  %3308 = vrcp.f32 %v2460_v48 }
 0x2b5   : > { %v3307_v62 = vpop.eup %3306 }
 0x2b6   : > { %v2523_v6 = vsel %vm2507_vm14, %v4556_v58, %v2491_v18  ;;  %v2494_v3 = vmul.f32 %v3307_v62, %v2446_v54 }
 0x2b7   : > { %v2539_v12 = vadd.f32 %v3323_v41, %v2523_v6 }
 0x2b8   : > { %v2526_v19 = vsel %vm2510_vm15, %v4572_v28, %v2494_v3 }
 0x2b9   : > { %2555 = vst.msk [vmem:[%s4590_s19 + $0x60] sm:$0xff] %vm535_vm1, %v2539_v12  ;;  %v2542_v32 = vadd.f32 %v3324_v21, %v2526_v19 }
 0x2bb   : > { %2558 = vst.msk [vmem:[%s4590_s19 + $0x78] sm:$0xff] %vm535_vm1, %v2542_v32 }
 0x2c1   : > { %v3309_v45 = vpop.eup %3308 }
 0x2c2   : > { %v2492_v33 = vmul.f32 %v3309_v45, %v2444_v50 }
 0x2c4   : > { %v2524_v58 = vsel %vm2508_vm0, %v4627_v1, %v2492_v33 }
 0x2c5   : > { %v2540_v2 = vadd.f32 %v3325_v43, %v2524_v58 }
 0x2c7   : > { %2556 = vst.msk [vmem:[%s4590_s19 + $0x68] sm:$0xff] %vm535_vm1, %v2540_v2 }
 0x2c8 PF: > { %s19_s13 = sadd.s32 1, %s3364_s13   ;;  %s4784_s30 = smov %s3356_s11 }
 0x2c9   : > { %p16_p12 = scmp.ge.s32.totalorder %s19_s13, 6   ;;  %s4785_s10 = smov %s3360_s12 }
 0x2ca   : > { %s4786_s11 = smov %s4789_s14  ;;  %s4787_s12 = smov %s4793_s15 }
 0x2cb   :  { %18 = sbr.rel (!%p16_p12) target bundleno = 3 (0x3), region = 100 }

</bundles_post_ra>
